<compile_context>
chip_gen: v7x
topology: tpu7x:2x2x1
jax: 0.10.0
libtpu: 0.0.40
codegen_flags: <defaults>
</compile_context>

<pallas_src>
import jax
import jax.numpy as jnp
from jax import lax
from jax.experimental import pallas as pl
from jax.experimental.pallas import tpu as pltpu

EPS = 1e-5
KH = KW = 3
PAD = 1


def preact_conv_kernel(x_ref, scale_ref, shift_ref, w_ref, o_ref,
                       pad_ref, patch_ref):
    # x_ref:     (1, H, W, Cin)       one batch sample (NHWC block)
    # scale_ref: (1, Cin)             gamma * rsqrt(var + eps)
    # shift_ref: (1, Cin)             beta - mean * scale
    # w_ref:     (KH*KW*Cin, Cout_p)  tap-stacked conv weight (zero-padded cols)
    # o_ref:     (1, H, W, Cout_p)
    # pad_ref:   (1, H+2, W+2, Cin)   VMEM scratch: zero halo + activations
    # patch_ref: (H*W, KH*KW*Cin)     VMEM scratch: im2col patch
    _, H, W, Cin = x_ref.shape
    cout_p = o_ref.shape[-1]

    x = x_ref[...].astype(jnp.float32)
    scale = scale_ref[...].reshape(1, 1, 1, Cin).astype(jnp.float32)
    shift = shift_ref[...].reshape(1, 1, 1, Cin).astype(jnp.float32)

    # Folded BatchNorm: one FMA per element.
    xn = x * scale + shift
    # ELU (alpha = 1.0).
    act = jnp.where(xn > 0, xn, jnp.exp(xn) - 1.0)

    # Zero only the 1-pixel halo (4 thin stores); interior written once below.
    pad_ref[:, 0:PAD, :, :] = jnp.zeros((1, PAD, W + 2 * PAD, Cin), jnp.float32)
    pad_ref[:, H + PAD:H + 2 * PAD, :, :] = jnp.zeros(
        (1, PAD, W + 2 * PAD, Cin), jnp.float32)
    pad_ref[:, :, 0:PAD, :] = jnp.zeros((1, H + 2 * PAD, PAD, Cin), jnp.float32)
    pad_ref[:, :, W + PAD:W + 2 * PAD, :] = jnp.zeros(
        (1, H + 2 * PAD, PAD, Cin), jnp.float32)
    pad_ref[:, PAD:PAD + H, PAD:PAD + W, :] = act

    # im2col: pack the 9 shifted windows into one (H*W, 9*Cin) patch so the
    # conv is a single MXU matmul with K = 9*Cin instead of nine K=Cin matmuls.
    for kh in range(KH):
        for kw in range(KW):
            t = kh * KW + kw
            patch_ref[:, t * Cin:(t + 1) * Cin] = (
                pad_ref[:, kh:kh + H, kw:kw + W, :].reshape(H * W, Cin))

    out = jnp.dot(patch_ref[...], w_ref[...],
                  preferred_element_type=jnp.float32)        # (H*W, Cout_p)
    o_ref[...] = out.reshape(1, H, W, cout_p).astype(o_ref.dtype)


def preact_block(x_nchw, gamma, beta, conv_w):
    """x_nchw: (N, Cin, H, W); conv_w: (Cout, Cin, KH, KW) [PyTorch layouts]."""
    N, Cin, H, W = x_nchw.shape
    Cout = conv_w.shape[0]
    cout_p = ((Cout + 127) // 128) * 128     # lane-dense output channel count

    # ---- BN stats pre-pass (cheap jnp reductions), folded to scale/shift ----
    xf = x_nchw.astype(jnp.float32)
    mean = jnp.mean(xf, axis=(0, 2, 3))                        # (Cin,)
    var = jnp.var(xf, axis=(0, 2, 3))                          # biased
    scale_1d = gamma.astype(jnp.float32) * lax.rsqrt(var + EPS)
    shift_1d = beta.astype(jnp.float32) - mean * scale_1d
    scale = scale_1d.reshape(1, Cin)
    shift = shift_1d.reshape(1, Cin)

    # ---- layout plumbing: NCHW -> NHWC, OIHW -> tap-stacked (9*Cin, Cout_p) --
    x_nhwc = jnp.transpose(x_nchw, (0, 2, 3, 1))
    w_mat = jnp.transpose(conv_w, (2, 3, 1, 0)).reshape(KH * KW * Cin, Cout)
    w_mat = w_mat.astype(jnp.float32)
    if cout_p != Cout:
        w_mat = jnp.pad(w_mat, ((0, 0), (0, cout_p - Cout)))

    out_nhwc_p = pl.pallas_call(
        preact_conv_kernel,
        out_shape=jax.ShapeDtypeStruct((N, H, W, cout_p), x_nchw.dtype),
        grid=(N,),
        in_specs=[
            pl.BlockSpec((1, H, W, Cin), lambda n: (n, 0, 0, 0)),
            pl.BlockSpec((1, Cin), lambda n: (0, 0)),
            pl.BlockSpec((1, Cin), lambda n: (0, 0)),
            pl.BlockSpec((KH * KW * Cin, cout_p), lambda n: (0, 0)),
        ],
        out_specs=pl.BlockSpec((1, H, W, cout_p), lambda n: (n, 0, 0, 0)),
        scratch_shapes=[
            pltpu.VMEM((1, H + 2 * PAD, W + 2 * PAD, Cin), jnp.float32),
            pltpu.VMEM((H * W, KH * KW * Cin), jnp.float32),
        ],
        compiler_params=pltpu.CompilerParams(
            dimension_semantics=("parallel",)),
    )(x_nhwc, scale, shift, w_mat)

    out_nhwc = out_nhwc_p[..., :Cout]                          # drop lane pad
    return jnp.transpose(out_nhwc, (0, 3, 1, 2))               # NHWC -> NCHW


def preact_block_reference(x, gamma, beta, conv_w):
    """Pure-JAX reference mirroring the PyTorch forward (NCHW)."""
    xf = x.astype(jnp.float32)
    mean = jnp.mean(xf, axis=(0, 2, 3), keepdims=True)
    var = jnp.var(xf, axis=(0, 2, 3), keepdims=True)           # biased
    g = gamma.reshape(1, -1, 1, 1)
    b = beta.reshape(1, -1, 1, 1)
    xn = (xf - mean) / jnp.sqrt(var + EPS) * g + b
    act = jnp.where(xn > 0, xn, jnp.expm1(xn))
    out = lax.conv_general_dilated(
        act, conv_w.astype(jnp.float32),
        window_strides=(1, 1), padding=((PAD, PAD), (PAD, PAD)),
        dimension_numbers=("NCHW", "OIHW", "NCHW"))
    return out.astype(x.dtype)


if __name__ == "__main__":
    N, Cin, Cout, H, W = 2, 4, 8, 16, 16

    key = jax.random.PRNGKey(0)
    kx, kw = jax.random.split(key)

    x = jax.random.normal(kx, (N, Cin, H, W), dtype=jnp.float32)

    # Deterministic parameter init (shapes from the module __init__):
    #   bn.weight/bias: (Cin,), conv.weight: (Cout, Cin, 3, 3), no conv bias.
    gamma = 1.0 + 0.1 * jnp.arange(Cin, dtype=jnp.float32)
    beta = 0.05 * jnp.arange(Cin, dtype=jnp.float32)
    fan_in = Cin * KH * KW
    conv_w = (jax.random.normal(kw, (Cout, Cin, KH, KW), dtype=jnp.float32)
              * (2.0 / fan_in) ** 0.5)

    out = preact_block(x, gamma, beta, conv_w)
    out = jax.block_until_ready(out)

    ref = preact_block_reference(x, gamma, beta, conv_w)
    assert out.shape == (N, Cout, H, W)
    assert jnp.allclose(out, ref, rtol=2e-4, atol=2e-4), "mismatch vs reference"

    print("KERNEL_OK")
</pallas_src>

<mosaic_0001>
module attributes {stable_mosaic.version = 11 : i64} {
  func.func @preact_conv_kernel(%arg0: i32, %arg1: memref<1x16x16x4xf32, #tpu.memory_space<vmem>>, %arg2: memref<1x4xf32, #tpu.memory_space<vmem>>, %arg3: memref<1x4xf32, #tpu.memory_space<vmem>>, %arg4: memref<36x128xf32, #tpu.memory_space<vmem>>, %arg5: memref<1x16x16x128xf32, #tpu.memory_space<vmem>>, %arg6: memref<1x18x18x4xf32, #tpu.memory_space<vmem>>, %arg7: memref<256x36xf32, #tpu.memory_space<vmem>>) attributes {dimension_semantics = [#tpu.dimension_semantics<parallel>], iteration_bounds = array<i64: 2>, scalar_prefetch = 0 : i64, scratch_operands = 2 : i64, tpu.core_type = #tpu.core_type<tc>, window_params = [{transform_indices = @transform_0, window_bounds = array<i64: 1, 16, 16, 4>}, {pipeline_mode = #tpu.pipeline_mode<synchronous>, transform_indices = @transform_1, window_bounds = array<i64: 1, 4>}, {pipeline_mode = #tpu.pipeline_mode<synchronous>, transform_indices = @transform_2, window_bounds = array<i64: 1, 4>}, {pipeline_mode = #tpu.pipeline_mode<synchronous>, transform_indices = @transform_3, window_bounds = array<i64: 36, 128>}, {transform_indices = @transform_4, window_bounds = array<i64: 1, 16, 16, 128>}]} {
    %c0 = arith.constant 0 : index
    %c0_0 = arith.constant 0 : index
    %c0_1 = arith.constant 0 : index
    %c0_2 = arith.constant 0 : index
    %0 = vector.load %arg1[%c0, %c0_0, %c0_1, %c0_2] : memref<1x16x16x4xf32, #tpu.memory_space<vmem>>, vector<1x16x16x4xf32>
    %c0_3 = arith.constant 0 : index
    %c0_4 = arith.constant 0 : index
    %1 = vector.load %arg2[%c0_3, %c0_4] : memref<1x4xf32, #tpu.memory_space<vmem>>, vector<1x4xf32>
    %2 = vector.shape_cast %1 : vector<1x4xf32> to vector<1x1x1x4xf32>
    %c0_5 = arith.constant 0 : index
    %c0_6 = arith.constant 0 : index
    %3 = vector.load %arg3[%c0_5, %c0_6] : memref<1x4xf32, #tpu.memory_space<vmem>>, vector<1x4xf32>
    %4 = vector.shape_cast %3 : vector<1x4xf32> to vector<1x1x1x4xf32>
    %5 = vector.broadcast %2 : vector<1x1x1x4xf32> to vector<1x16x16x4xf32>
    %6 = arith.mulf %0, %5 : vector<1x16x16x4xf32>
    %7 = vector.broadcast %4 : vector<1x1x1x4xf32> to vector<1x16x16x4xf32>
    %8 = arith.addf %6, %7 : vector<1x16x16x4xf32>
    %cst = arith.constant 0.000000e+00 : f32
    %9 = vector.broadcast %cst : f32 to vector<1x16x16x4xf32>
    %10 = arith.cmpf ogt, %8, %9 : vector<1x16x16x4xf32>
    %11 = math.exp %8 : vector<1x16x16x4xf32>
    %cst_7 = arith.constant 1.000000e+00 : f32
    %12 = vector.broadcast %cst_7 : f32 to vector<1x16x16x4xf32>
    %13 = arith.subf %11, %12 : vector<1x16x16x4xf32>
    %14 = arith.select %10, %8, %13 : vector<1x16x16x4xi1>, vector<1x16x16x4xf32>
    %cst_8 = arith.constant 0.000000e+00 : f32
    %15 = vector.broadcast %cst_8 : f32 to vector<1x1x18x4xf32>
    %c0_9 = arith.constant 0 : index
    %c0_10 = arith.constant 0 : index
    %c0_11 = arith.constant 0 : index
    %c0_12 = arith.constant 0 : index
    %16 = vector.load %arg6[%c0_9, %c0_10, %c0_11, %c0_12] : memref<1x18x18x4xf32, #tpu.memory_space<vmem>>, vector<1x1x18x4xf32>
    tpu.vector_store %arg6[%c0_9, %c0_10, %c0_11, %c0_12], %15 {strides = array<i32>} : memref<1x18x18x4xf32, #tpu.memory_space<vmem>>, vector<1x1x18x4xf32>,
    %cst_13 = arith.constant 0.000000e+00 : f32
    %17 = vector.broadcast %cst_13 : f32 to vector<1x1x18x4xf32>
    %c0_14 = arith.constant 0 : index
    %c17 = arith.constant 17 : index
    %c0_15 = arith.constant 0 : index
    %c0_16 = arith.constant 0 : index
    %18 = vector.load %arg6[%c0_14, %c17, %c0_15, %c0_16] : memref<1x18x18x4xf32, #tpu.memory_space<vmem>>, vector<1x1x18x4xf32>
    tpu.vector_store %arg6[%c0_14, %c17, %c0_15, %c0_16], %17 {strides = array<i32>} : memref<1x18x18x4xf32, #tpu.memory_space<vmem>>, vector<1x1x18x4xf32>,
    %cst_17 = arith.constant 0.000000e+00 : f32
    %19 = vector.broadcast %cst_17 : f32 to vector<1x18x1x4xf32>
    %c0_18 = arith.constant 0 : index
    %c0_19 = arith.constant 0 : index
    %c0_20 = arith.constant 0 : index
    %c0_21 = arith.constant 0 : index
    %20 = vector.load %arg6[%c0_18, %c0_19, %c0_20, %c0_21] : memref<1x18x18x4xf32, #tpu.memory_space<vmem>>, vector<1x18x1x4xf32>
    tpu.vector_store %arg6[%c0_18, %c0_19, %c0_20, %c0_21], %19 {strides = array<i32>} : memref<1x18x18x4xf32, #tpu.memory_space<vmem>>, vector<1x18x1x4xf32>,
    %cst_22 = arith.constant 0.000000e+00 : f32
    %21 = vector.broadcast %cst_22 : f32 to vector<1x18x1x4xf32>
    %c0_23 = arith.constant 0 : index
    %c0_24 = arith.constant 0 : index
    %c17_25 = arith.constant 17 : index
    %c0_26 = arith.constant 0 : index
    %22 = vector.load %arg6[%c0_23, %c0_24, %c17_25, %c0_26] : memref<1x18x18x4xf32, #tpu.memory_space<vmem>>, vector<1x18x1x4xf32>
    tpu.vector_store %arg6[%c0_23, %c0_24, %c17_25, %c0_26], %21 {strides = array<i32>} : memref<1x18x18x4xf32, #tpu.memory_space<vmem>>, vector<1x18x1x4xf32>,
    %c0_27 = arith.constant 0 : index
    %c1 = arith.constant 1 : index
    %c1_28 = arith.constant 1 : index
    %c0_29 = arith.constant 0 : index
    %23 = vector.load %arg6[%c0_27, %c1, %c1_28, %c0_29] : memref<1x18x18x4xf32, #tpu.memory_space<vmem>>, vector<1x16x16x4xf32>
    tpu.vector_store %arg6[%c0_27, %c1, %c1_28, %c0_29], %14 {strides = array<i32>} : memref<1x18x18x4xf32, #tpu.memory_space<vmem>>, vector<1x16x16x4xf32>,
    %c0_30 = arith.constant 0 : index
    %c0_31 = arith.constant 0 : index
    %c0_32 = arith.constant 0 : index
    %c0_33 = arith.constant 0 : index
    %24 = vector.load %arg6[%c0_30, %c0_31, %c0_32, %c0_33] : memref<1x18x18x4xf32, #tpu.memory_space<vmem>>, vector<1x16x16x4xf32>
    %25 = vector.shape_cast %24 : vector<1x16x16x4xf32> to vector<256x4xf32>
    %c0_34 = arith.constant 0 : index
    %c0_35 = arith.constant 0 : index
    %26 = vector.load %arg7[%c0_34, %c0_35] : memref<256x36xf32, #tpu.memory_space<vmem>>, vector<256x4xf32>
    tpu.vector_store %arg7[%c0_34, %c0_35], %25 {strides = array<i32>} : memref<256x36xf32, #tpu.memory_space<vmem>>, vector<256x4xf32>,
    %c0_36 = arith.constant 0 : index
    %c0_37 = arith.constant 0 : index
    %c1_38 = arith.constant 1 : index
    %c0_39 = arith.constant 0 : index
    %27 = vector.load %arg6[%c0_36, %c0_37, %c1_38, %c0_39] : memref<1x18x18x4xf32, #tpu.memory_space<vmem>>, vector<1x16x16x4xf32>
    %28 = vector.shape_cast %27 : vector<1x16x16x4xf32> to vector<256x4xf32>
    %c0_40 = arith.constant 0 : index
    %c4 = arith.constant 4 : index
    %29 = vector.load %arg7[%c0_40, %c4] : memref<256x36xf32, #tpu.memory_space<vmem>>, vector<256x4xf32>
    tpu.vector_store %arg7[%c0_40, %c4], %28 {strides = array<i32>} : memref<256x36xf32, #tpu.memory_space<vmem>>, vector<256x4xf32>,
    %c0_41 = arith.constant 0 : index
    %c0_42 = arith.constant 0 : index
    %c2 = arith.constant 2 : index
    %c0_43 = arith.constant 0 : index
    %30 = vector.load %arg6[%c0_41, %c0_42, %c2, %c0_43] : memref<1x18x18x4xf32, #tpu.memory_space<vmem>>, vector<1x16x16x4xf32>
    %31 = vector.shape_cast %30 : vector<1x16x16x4xf32> to vector<256x4xf32>
    %c0_44 = arith.constant 0 : index
    %c8 = arith.constant 8 : index
    %32 = vector.load %arg7[%c0_44, %c8] : memref<256x36xf32, #tpu.memory_space<vmem>>, vector<256x4xf32>
    tpu.vector_store %arg7[%c0_44, %c8], %31 {strides = array<i32>} : memref<256x36xf32, #tpu.memory_space<vmem>>, vector<256x4xf32>,
    %c0_45 = arith.constant 0 : index
    %c1_46 = arith.constant 1 : index
    %c0_47 = arith.constant 0 : index
    %c0_48 = arith.constant 0 : index
    %33 = vector.load %arg6[%c0_45, %c1_46, %c0_47, %c0_48] : memref<1x18x18x4xf32, #tpu.memory_space<vmem>>, vector<1x16x16x4xf32>
    %34 = vector.shape_cast %33 : vector<1x16x16x4xf32> to vector<256x4xf32>
    %c0_49 = arith.constant 0 : index
    %c12 = arith.constant 12 : index
    %35 = vector.load %arg7[%c0_49, %c12] : memref<256x36xf32, #tpu.memory_space<vmem>>, vector<256x4xf32>
    tpu.vector_store %arg7[%c0_49, %c12], %34 {strides = array<i32>} : memref<256x36xf32, #tpu.memory_space<vmem>>, vector<256x4xf32>,
    %c0_50 = arith.constant 0 : index
    %c1_51 = arith.constant 1 : index
    %c1_52 = arith.constant 1 : index
    %c0_53 = arith.constant 0 : index
    %36 = vector.load %arg6[%c0_50, %c1_51, %c1_52, %c0_53] : memref<1x18x18x4xf32, #tpu.memory_space<vmem>>, vector<1x16x16x4xf32>
    %37 = vector.shape_cast %36 : vector<1x16x16x4xf32> to vector<256x4xf32>
    %c0_54 = arith.constant 0 : index
    %c16 = arith.constant 16 : index
    %38 = vector.load %arg7[%c0_54, %c16] : memref<256x36xf32, #tpu.memory_space<vmem>>, vector<256x4xf32>
    tpu.vector_store %arg7[%c0_54, %c16], %37 {strides = array<i32>} : memref<256x36xf32, #tpu.memory_space<vmem>>, vector<256x4xf32>,
    %c0_55 = arith.constant 0 : index
    %c1_56 = arith.constant 1 : index
    %c2_57 = arith.constant 2 : index
    %c0_58 = arith.constant 0 : index
    %39 = vector.load %arg6[%c0_55, %c1_56, %c2_57, %c0_58] : memref<1x18x18x4xf32, #tpu.memory_space<vmem>>, vector<1x16x16x4xf32>
    %40 = vector.shape_cast %39 : vector<1x16x16x4xf32> to vector<256x4xf32>
    %c0_59 = arith.constant 0 : index
    %c20 = arith.constant 20 : index
    %41 = vector.load %arg7[%c0_59, %c20] : memref<256x36xf32, #tpu.memory_space<vmem>>, vector<256x4xf32>
    tpu.vector_store %arg7[%c0_59, %c20], %40 {strides = array<i32>} : memref<256x36xf32, #tpu.memory_space<vmem>>, vector<256x4xf32>,
    %c0_60 = arith.constant 0 : index
    %c2_61 = arith.constant 2 : index
    %c0_62 = arith.constant 0 : index
    %c0_63 = arith.constant 0 : index
    %42 = vector.load %arg6[%c0_60, %c2_61, %c0_62, %c0_63] : memref<1x18x18x4xf32, #tpu.memory_space<vmem>>, vector<1x16x16x4xf32>
    %43 = vector.shape_cast %42 : vector<1x16x16x4xf32> to vector<256x4xf32>
    %c0_64 = arith.constant 0 : index
    %c24 = arith.constant 24 : index
    %44 = vector.load %arg7[%c0_64, %c24] : memref<256x36xf32, #tpu.memory_space<vmem>>, vector<256x4xf32>
    tpu.vector_store %arg7[%c0_64, %c24], %43 {strides = array<i32>} : memref<256x36xf32, #tpu.memory_space<vmem>>, vector<256x4xf32>,
    %c0_65 = arith.constant 0 : index
    %c2_66 = arith.constant 2 : index
    %c1_67 = arith.constant 1 : index
    %c0_68 = arith.constant 0 : index
    %45 = vector.load %arg6[%c0_65, %c2_66, %c1_67, %c0_68] : memref<1x18x18x4xf32, #tpu.memory_space<vmem>>, vector<1x16x16x4xf32>
    %46 = vector.shape_cast %45 : vector<1x16x16x4xf32> to vector<256x4xf32>
    %c0_69 = arith.constant 0 : index
    %c28 = arith.constant 28 : index
    %47 = vector.load %arg7[%c0_69, %c28] : memref<256x36xf32, #tpu.memory_space<vmem>>, vector<256x4xf32>
    tpu.vector_store %arg7[%c0_69, %c28], %46 {strides = array<i32>} : memref<256x36xf32, #tpu.memory_space<vmem>>, vector<256x4xf32>,
    %c0_70 = arith.constant 0 : index
    %c2_71 = arith.constant 2 : index
    %c2_72 = arith.constant 2 : index
    %c0_73 = arith.constant 0 : index
    %48 = vector.load %arg6[%c0_70, %c2_71, %c2_72, %c0_73] : memref<1x18x18x4xf32, #tpu.memory_space<vmem>>, vector<1x16x16x4xf32>
    %49 = vector.shape_cast %48 : vector<1x16x16x4xf32> to vector<256x4xf32>
    %c0_74 = arith.constant 0 : index
    %c32 = arith.constant 32 : index
    %50 = vector.load %arg7[%c0_74, %c32] : memref<256x36xf32, #tpu.memory_space<vmem>>, vector<256x4xf32>
    tpu.vector_store %arg7[%c0_74, %c32], %49 {strides = array<i32>} : memref<256x36xf32, #tpu.memory_space<vmem>>, vector<256x4xf32>,
    %c0_75 = arith.constant 0 : index
    %c0_76 = arith.constant 0 : index
    %51 = vector.load %arg7[%c0_75, %c0_76] : memref<256x36xf32, #tpu.memory_space<vmem>>, vector<256x36xf32>
    %c0_77 = arith.constant 0 : index
    %c0_78 = arith.constant 0 : index
    %52 = vector.load %arg4[%c0_77, %c0_78] : memref<36x128xf32, #tpu.memory_space<vmem>>, vector<36x128xf32>
    %cst_79 = arith.constant dense<0.000000e+00> : vector<256x128xf32>
    %53 = tpu.matmul %51, %52, %cst_79 {dimension_numbers = #tpu.dot_dimension_numbers<[1], [0], [0], [1], [0, 0, 1, 1], [], []>} : vector<256x36xf32>, vector<36x128xf32>, vector<256x128xf32> -> vector<256x128xf32>
    %54 = vector.shape_cast %53 : vector<256x128xf32> to vector<1x16x16x128xf32>
    %c0_80 = arith.constant 0 : index
    %c0_81 = arith.constant 0 : index
    %c0_82 = arith.constant 0 : index
    %c0_83 = arith.constant 0 : index
    %55 = vector.load %arg5[%c0_80, %c0_81, %c0_82, %c0_83] : memref<1x16x16x128xf32, #tpu.memory_space<vmem>>, vector<1x16x16x128xf32>
    tpu.vector_store %arg5[%c0_80, %c0_81, %c0_82, %c0_83], %54 {strides = array<i32>} : memref<1x16x16x128xf32, #tpu.memory_space<vmem>>, vector<1x16x16x128xf32>,
    return
  }
  func.func @transform_0(%arg0: i32) -> (i32, i32, i32, i32) {
    %c0_i32 = arith.constant 0 : i32
    %c0_i32_0 = arith.constant 0 : i32
    %c0_i32_1 = arith.constant 0 : i32
    %c0_i32_2 = arith.constant 0 : i32
    return %arg0, %c0_i32, %c0_i32_0, %c0_i32_1 : i32, i32, i32, i32
  }
  func.func @transform_1(%arg0: i32) -> (i32, i32) {
    %c0_i32 = arith.constant 0 : i32
    %c0_i32_0 = arith.constant 0 : i32
    %c0_i32_1 = arith.constant 0 : i32
    return %c0_i32, %c0_i32_0 : i32, i32
  }
  func.func @transform_2(%arg0: i32) -> (i32, i32) {
    %c0_i32 = arith.constant 0 : i32
    %c0_i32_0 = arith.constant 0 : i32
    %c0_i32_1 = arith.constant 0 : i32
    return %c0_i32, %c0_i32_0 : i32, i32
  }
  func.func @transform_3(%arg0: i32) -> (i32, i32) {
    %c0_i32 = arith.constant 0 : i32
    %c0_i32_0 = arith.constant 0 : i32
    %c0_i32_1 = arith.constant 0 : i32
    return %c0_i32, %c0_i32_0 : i32, i32
  }
  func.func @transform_4(%arg0: i32) -> (i32, i32, i32, i32) {
    %c0_i32 = arith.constant 0 : i32
    %c0_i32_0 = arith.constant 0 : i32
    %c0_i32_1 = arith.constant 0 : i32
    %c0_i32_2 = arith.constant 0 : i32
    return %arg0, %c0_i32, %c0_i32_0, %c0_i32_1 : i32, i32, i32, i32
  }
}

</mosaic_0001>

<bundles_post_ra>
// kernel: tpu_custom_call.1
= control target key start
LH: loop header
LB: loop body
LE: loop exit
PB: predicated region body
PF: predicated region fallthrough
CT: control target
= control target key end

     0   :  { %9 = vsyncpa [#allocation5], 0  ;;  %s4371_s0 = inlined_call_operand.vmem [shape: f32[2,16,16,4], index: 0, kind: input, shape index: {}]   ;;  %s4372_s1 = inlined_call_operand.vmem [shape: f32[1,4], index: 1, kind: input, shape index: {}]   ;;  %s4373_s2 = inlined_call_operand.vmem [shape: f32[1,4], index: 2, kind: input, shape index: {}]   ;;  %s4374_s3 = inlined_call_operand.vmem [shape: f32[36,128], index: 3, kind: input, shape index: {}]   ;;  %s4375_s4 = inlined_call_operand.hbm [shape: f32[2,16,16,128], index: 4, kind: output, shape index: {}]  }
   0x1   :  { %11 = vsyncpa [#allocation5 + $0x1], 0  ;;  %s3028_s15 = smov 0   ;;  %s3030_s16 = smov 0  }
   0x2   :  { %s3032_s17 = smov 0   ;;  %s3034_s18 = smov 0  }
   0x3 LB: > { %s3049_s19 = sadd.s32 4294967295, %s2990_s18   ;;  %s2625_s20 = sadd.s32 4294967294, %s2990_s18   ;;  %s2990_s18 = sphi %s3034_s18, %s4381_s18   ;;  %s2986_s17 = sphi %s3032_s17, %s4380_s17   ;;  %s2982_s16 = sphi %s3030_s16, %s4379_s16   ;;  %s2978_s15 = sphi %s3028_s15, %s4378_s15  }
   0x4   : > { %s3053_s21 = sadd.s32 1, %s2990_s18   ;;  %s113_s22 = sadd.s32 1, %s2986_s17 }
   0x5   : > { %s110_s23 = ssub.s32 %s2990_s18, %s3053_s21  ;;  %p123_p0 = scmp.ne.s32.totalorder %s2986_s17, %s2982_s16 }
   0x6   : > { %p111_p1 = scmp.eq.s32.totalorder %s110_s23, 0  ;;  %p124_p2 = scmp.eq.s32.totalorder %s3049_s19, 1 }
   0x7   : > { %p129_p3 = scmp.ne.s32.totalorder %s2982_s16, %s2978_s15  ;;  %p130_p4 = scmp.eq.s32.totalorder %s2625_s20, 1 }
   0x8   : > { %s3064_s24 = scalar_select %p111_p1, %s2986_s17, %s113_s22  }
   0x9   : > { %p3066_p5 = por %p124_p2, %p123_p0  ;;  %p3070_p6 = por %p130_p4, %p129_p3 }
   0xa   : > { %p2628_p7 = scmp.ge.s32.totalorder %s2990_s18, 1  ;;  %p165_p8 = scmp.lt.s32.totalorder %s2990_s18, 3 }
   0xc   : > { %p166_p9 = pnand %p2628_p7, %p165_p8 }
   0xd   : > { %vm466_vm0 = vcmask (!%p166_p9), 31744   ;;  %vm475_vm1 = vcmask (!%p166_p9), 24576   ;;  %p191_p10 = scmp.lt.s32.totalorder (!%p166_p9), %s3049_s19, 1  ;;  %vm469_vm2 = vcmask (!%p166_p9), 25600   ;;  %v2992_v0 = vmov (!%p166_p9), 0.0   ;;  %s2993_s10 = smov (!%p166_p9), 4  }
   0xe   : > { %169 = sbr.rel (%p166_p9) target bundleno = 913 (0x391), region = 36  ;;  %467 = vst.msk [vmem:[#allocation2] sm:$0xff] (!%p166_p9), %vm466_vm0, %v2992_v0  ;;  %468 = vst.msk [vmem:[#allocation2 + $0x8] sm:$0xff] (!%p166_p9), %vm466_vm0, %v2992_v0  ;;  %v3125_v1 = vld [vmem:[%s4372_s1] ss:$0 sm:$0xff] (!%p166_p9)  ;;  %s2994_s11 = smov (!%p166_p9), 8  }
   0xf   : > { %472 = vst.msk [vmem:[#allocation2 + $0x198] sm:$0xff] (!%p166_p9), %vm466_vm0, %v2992_v0  ;;  %473 = vst.msk [vmem:[#allocation2 + $0x1a0] sm:$0xff] (!%p166_p9), %vm466_vm0, %v2992_v0  ;;  %v3135_v2 = vld [vmem:[%s4373_s2] ss:$0 sm:$0xff] (!%p166_p9)  ;;  %s2995_s12 = smov (!%p166_p9), 12   ;;  %s2996_s13 = smov (!%p166_p9), 16  }
  0x10   : > { %477 = vst.msk [vmem:[#allocation2 + $0x18] sm:$0x1] (!%p166_p9), %vm475_vm1, %v2992_v0  ;;  %478 = vst.msk [vmem:[#allocation2 + $0x30] sm:$0x1] (!%p166_p9), %vm475_vm1, %v2992_v0  ;;  %s2997_s14 = smov (!%p166_p9), 20   ;;  %s2998_s20 = smov (!%p166_p9), 24  }
  0x11   : > { %479 = vst.msk [vmem:[#allocation2 + $0x48] sm:$0x1] (!%p166_p9), %vm475_vm1, %v2992_v0  ;;  %480 = vst.msk [vmem:[#allocation2 + $0x60] sm:$0x1] (!%p166_p9), %vm475_vm1, %v2992_v0  ;;  %s2999_s22 = smov (!%p166_p9), 28   ;;  %s3000_s8 = smov (!%p166_p9), 32  }
  0x12   : > { %481 = vst.msk [vmem:[#allocation2 + $0x78] sm:$0x1] (!%p166_p9), %vm475_vm1, %v2992_v0  ;;  %482 = vst.msk [vmem:[#allocation2 + $0x90] sm:$0x1] (!%p166_p9), %vm475_vm1, %v2992_v0 }
  0x13   : > { %483 = vst.msk [vmem:[#allocation2 + $0xa8] sm:$0x1] (!%p166_p9), %vm475_vm1, %v2992_v0  ;;  %484 = vst.msk [vmem:[#allocation2 + $0xc0] sm:$0x1] (!%p166_p9), %vm475_vm1, %v2992_v0 }
  0x14   : > { %485 = vst.msk [vmem:[#allocation2 + $0xd8] sm:$0x1] (!%p166_p9), %vm475_vm1, %v2992_v0  ;;  %486 = vst.msk [vmem:[#allocation2 + $0xf0] sm:$0x1] (!%p166_p9), %vm475_vm1, %v2992_v0 }
  0x15   : > { %487 = vst.msk [vmem:[#allocation2 + $0x108] sm:$0x1] %vm475_vm1, %v2992_v0  ;;  %488 = vst.msk [vmem:[#allocation2 + $0x120] sm:$0x1] %vm475_vm1, %v2992_v0  ;;  %s192_s27 = scalar_select %p191_p10, %s3049_s19, 1  ;;  %v609_v12 = vld [vmem:[#allocation2 + $0x1] sm:$0xff] }
  0x16   : > { %489 = vst.msk [vmem:[#allocation2 + $0x138] sm:$0x1] %vm475_vm1, %v2992_v0  ;;  %490 = vst.msk [vmem:[#allocation2 + $0x150] sm:$0x1] %vm475_vm1, %v2992_v0  ;;  %673 = vrot.lane.b32.xlu0 %v609_v12, %s2993_s10 }
  0x17   : > { %491 = vst.msk [vmem:[#allocation2 + $0x168] sm:$0x1] %vm475_vm1, %v2992_v0  ;;  %492 = vst.msk [vmem:[#allocation2 + $0x180] sm:$0x1] %vm475_vm1, %v2992_v0  ;;  %s2704_s28 = sshll.u32 %s192_s27, 8 }
  0x18   : > { %495 = vst.msk [vmem:[#allocation2 + $0x29] sm:$0x1] %vm475_vm1, %v2992_v0  ;;  %496 = vst.msk [vmem:[#allocation2 + $0x41] sm:$0x1] %vm475_vm1, %v2992_v0  ;;  %s3130_s7 = scalar_lea.vmem %s4371_s0, %s2704_s28 }
  0x19   : > { %497 = vst.msk [vmem:[#allocation2 + $0x59] sm:$0x1] %vm475_vm1, %v2992_v0  ;;  %498 = vst.msk [vmem:[#allocation2 + $0x71] sm:$0x1] %vm475_vm1, %v2992_v0  ;;  %v196_v3 = vld [vmem:[%s3130_s7] sm:$0xff]  ;;  %v197_v4 = vld [vmem:[%s3130_s7 + $0x8] sm:$0xff] }
  0x1a   : > { %499 = vst.msk [vmem:[#allocation2 + $0x89] sm:$0x1] %vm475_vm1, %v2992_v0  ;;  %500 = vst.msk [vmem:[#allocation2 + $0xa1] sm:$0x1] %vm475_vm1, %v2992_v0  ;;  %v198_v5 = vld [vmem:[%s3130_s7 + $0x10] sm:$0xff]  ;;  %v236_v6 = vmul.f32 %v3125_v1, %v196_v3  ;;  %v237_v7 = vmul.f32 %v3125_v1, %v197_v4  ;;  %v199_v9 = vld [vmem:[%s3130_s7 + $0x18] sm:$0xff] }
  0x1b   : > { %501 = vst.msk [vmem:[#allocation2 + $0xb9] sm:$0x1] %vm475_vm1, %v2992_v0  ;;  %502 = vst.msk [vmem:[#allocation2 + $0xd1] sm:$0x1] %vm475_vm1, %v2992_v0  ;;  %v238_v8 = vmul.f32 %v3125_v1, %v198_v5  ;;  %v200_v10 = vld [vmem:[%s3130_s7 + $0x20] sm:$0xff]  ;;  %v201_v11 = vld [vmem:[%s3130_s7 + $0x28] sm:$0xff]  ;;  %v239_v13 = vmul.f32 %v3125_v1, %v199_v9 }
  0x1c   : > { %503 = vst.msk [vmem:[#allocation2 + $0xe9] sm:$0x1] %vm475_vm1, %v2992_v0  ;;  %504 = vst.msk [vmem:[#allocation2 + $0x101] sm:$0x1] %vm475_vm1, %v2992_v0  ;;  %v240_v14 = vmul.f32 %v3125_v1, %v200_v10  ;;  %v241_v15 = vmul.f32 %v3125_v1, %v201_v11  ;;  %v202_v16 = vld [vmem:[%s3130_s7 + $0x30] sm:$0xff]  ;;  %v3152_v17 = vadd.f32 %v3135_v2, %v236_v6  ;;  %v203_v21 = vld [vmem:[%s3130_s7 + $0x38] sm:$0xff] }
  0x1d   : > { %505 = vst.msk [vmem:[#allocation2 + $0x119] sm:$0x1] %vm475_vm1, %v2992_v0  ;;  %506 = vst.msk [vmem:[#allocation2 + $0x131] sm:$0x1] %vm475_vm1, %v2992_v0  ;;  %v3155_v18 = vadd.f32 %v3135_v2, %v237_v7  ;;  %v3158_v19 = vadd.f32 %v3135_v2, %v238_v8  ;;  %v242_v20 = vmul.f32 %v3125_v1, %v202_v16  ;;  %v204_v29 = vld [vmem:[%s3130_s7 + $0x40] sm:$0xff]  ;;  %v205_v32 = vld [vmem:[%s3130_s7 + $0x48] sm:$0xff] }
  0x1e   : > { %507 = vst.msk [vmem:[#allocation2 + $0x149] sm:$0x1] %vm475_vm1, %v2992_v0  ;;  %508 = vst.msk [vmem:[#allocation2 + $0x161] sm:$0x1] %vm475_vm1, %v2992_v0  ;;  %v3163_v23 = vadd.f32 %v3135_v2, %v239_v13  ;;  %v3166_v24 = vadd.f32 %v3135_v2, %v240_v14  ;;  %v3169_v25 = vadd.f32 %v3135_v2, %v241_v15  ;;  %v338_v27 = vmul.f32 1.442695, %v3152_v17 }
  0x1f   : > { %509 = vst.msk [vmem:[#allocation2 + $0x179] sm:$0x1] %vm475_vm1, %v2992_v0  ;;  %510 = vst.msk [vmem:[#allocation2 + $0x191] sm:$0x1] %vm475_vm1, %v2992_v0  ;;  %v243_v26 = vmul.f32 %v3125_v1, %v203_v21  ;;  %v340_v28 = vmul.f32 1.442695, %v3155_v18  ;;  %v3183_v36 = vadd.f32 %v3135_v2, %v242_v20  ;;  %v244_v38 = vmul.f32 %v3125_v1, %v204_v29 }
  0x20   : > { %470 = vst.msk [vmem:[#allocation2 + $0x10] sm:$0x3] %vm469_vm2, %v2992_v0  ;;  %474 = vst.msk [vmem:[#allocation2 + $0x1a8] sm:$0x3] %vm469_vm2, %v2992_v0  ;;  %v342_v30 = vmul.f32 1.442695, %v3158_v19  ;;  %2864 = vpow2.f32 %v338_v27  ;;  %v245_v39 = vmul.f32 %v3125_v1, %v205_v32 }
  0x21   : > { %476 = vst.msk [vmem:[#allocation2] sm:$0x1] %vm475_vm1, %v2992_v0  ;;  %493 = vst.msk [vmem:[#allocation2 + $0x198] sm:$0x1] %vm475_vm1, %v2992_v0  ;;  %v344_v31 = vmul.f32 1.442695, %v3163_v23  ;;  %2866 = vpow2.f32 %v340_v28  ;;  %v3186_v37 = vadd.f32 %v3135_v2, %v243_v26  ;;  %v3199_v45 = vadd.f32 %v3135_v2, %v244_v38 }
  0x22   : > { %494 = vst.msk [vmem:[#allocation2 + $0x11] sm:$0x1] %vm475_vm1, %v2992_v0  ;;  %511 = vst.msk [vmem:[#allocation2 + $0x1a9] sm:$0x1] %vm475_vm1, %v2992_v0  ;;  %v206_v33 = vld [vmem:[%s3130_s7 + $0x50] sm:$0xff]  ;;  %2868 = vpow2.f32 %v342_v30  ;;  %v207_v41 = vld [vmem:[%s3130_s7 + $0x58] sm:$0xff]  ;;  %v3202_v46 = vadd.f32 %v3135_v2, %v245_v39 }
  0x23   : > { %v346_v34 = vmul.f32 1.442695, %v3166_v24  ;;  %v348_v35 = vmul.f32 1.442695, %v3169_v25  ;;  %v246_v40 = vmul.f32 %v3125_v1, %v206_v33  ;;  %v208_v42 = vld [vmem:[%s3130_s7 + $0x60] sm:$0xff]  ;;  %vm306_vm3 = vcmp.gt.f32.partialorder %v3152_v17, 0.0 }
  0x24   : > { %vm307_vm4 = vcmp.gt.f32.partialorder %v3155_v18, 0.0  ;;  %2870 = vpow2.f32 %v344_v31  ;;  %v350_v43 = vmul.f32 1.442695, %v3183_v36  ;;  %vm308_vm5 = vcmp.gt.f32.partialorder %v3158_v19, 0.0  ;;  %v209_v50 = vld [vmem:[%s3130_s7 + $0x68] sm:$0xff]  ;;  %v210_v52 = vld [vmem:[%s3130_s7 + $0x70] sm:$0xff] }
  0x25   : > { %2872 = vpow2.f32 %v346_v34  ;;  %v352_v44 = vmul.f32 1.442695, %v3186_v37  ;;  %v3205_v47 = vadd.f32 %v3135_v2, %v246_v40  ;;  %v247_v48 = vmul.f32 %v3125_v1, %v207_v41  ;;  %v211_v53 = vld [vmem:[%s3130_s7 + $0x78] sm:$0xff]  ;;  %v212_v56 = vld [vmem:[%s3130_s7 + $0x80] sm:$0xff]  ;;  %v546_v4 = vld [vmem:[#allocation2 + $0x8] sm:$0xff] }
  0x26   : > { %2874 = vpow2.f32 %v348_v35  ;;  %v248_v49 = vmul.f32 %v3125_v1, %v208_v42  ;;  %vm309_vm6 = vcmp.gt.f32.partialorder %v3163_v23, 0.0  ;;  %vm310_vm7 = vcmp.gt.f32.partialorder %v3166_v24, 0.0  ;;  %578 = vst.msk [vmem:[#allocation3 + $0x8] sm:$0xff] %vm466_vm0, %v546_v4  ;;  %v213_v33 = vld [vmem:[%s3130_s7 + $0x88] sm:$0xff]  ;;  %v214_v34 = vld [vmem:[%s3130_s7 + $0x90] sm:$0xff] }
  0x27   : > { %v610_v22 = vld [vmem:[#allocation2 + $0x9] sm:$0xff]  ;;  %2876 = vpow2.f32 %v350_v43  ;;  %v354_v51 = vmul.f32 1.442695, %v3199_v45  ;;  %vm311_vm8 = vcmp.gt.f32.partialorder %v3169_v25, 0.0  ;;  %v356_v54 = vmul.f32 1.442695, %v3202_v46 }
  0x28   : > { %675 = vrot.lane.b32.xlu0 %v610_v22, %s2993_s10  ;;  %2878 = vpow2.f32 %v352_v44  ;;  %v358_v55 = vmul.f32 1.442695, %v3205_v47  ;;  %vm312_vm9 = vcmp.gt.f32.partialorder %v3183_v36, 0.0  ;;  %v3221_v57 = vadd.f32 %v3135_v2, %v247_v48  ;;  %v545_v60 = vld [vmem:[#allocation2] sm:$0xff] }
  0x29   : > { %2880 = vpow2.f32 %v354_v51  ;;  %v3224_v58 = vadd.f32 %v3135_v2, %v248_v49  ;;  %v249_v59 = vmul.f32 %v3125_v1, %v209_v50  ;;  %vm313_vm10 = vcmp.gt.f32.partialorder %v3186_v37, 0.0  ;;  %577 = vst.msk [vmem:[#allocation3] sm:$0xff] %vm466_vm0, %v545_v60  ;;  %v216_v50 = vld [vmem:[%s3130_s7 + $0xa0] sm:$0xff]  ;;  %v217_v51 = vld [vmem:[%s3130_s7 + $0xa8] sm:$0xff] }
  0x2a   : > { %2882 = vpow2.f32 %v356_v54  ;;  %v250_v61 = vmul.f32 %v3125_v1, %v210_v52  ;;  %v251_v62 = vmul.f32 %v3125_v1, %v211_v53  ;;  %v2865_v63 = vpop.eup %2864  ;;  %vm314_vm11 = vcmp.gt.f32.partialorder %v3199_v45, 0.0 }
  0x2b   : > { %2884 = vpow2.f32 %v358_v55  ;;  %v360_v0 = vmul.f32 1.442695, %v3221_v57  ;;  %v252_v3 = vmul.f32 %v3125_v1, %v212_v56  ;;  %v2867_v5 = vpop.eup %2866  ;;  %v2634_v6 = vadd.f32 -1.0, %v2865_v63 }
  0x2c   : > { %v362_v7 = vmul.f32 1.442695, %v3224_v58  ;;  %v3236_v8 = vadd.f32 %v3135_v2, %v249_v59  ;;  %v3239_v9 = vadd.f32 %v3135_v2, %v250_v61  ;;  %v2869_v10 = vpop.eup %2868  ;;  %v2635_v11 = vadd.f32 -1.0, %v2867_v5 }
  0x2d   : > { %vm315_vm12 = vcmp.gt.f32.partialorder %v3202_v46, 0.0  ;;  %2886 = vpow2.f32 %v360_v0  ;;  %v3244_v12 = vadd.f32 %v3135_v2, %v251_v62  ;;  %v434_v14 = vsel %vm306_vm3, %v3152_v17, %v2634_v6 }
  0x2e   : > { %v2871_v13 = vpop.eup %2870  ;;  %v2636_v15 = vadd.f32 -1.0, %v2869_v10  ;;  %vm316_vm13 = vcmp.gt.f32.partialorder %v3205_v47, 0.0  ;;  %2888 = vpow2.f32 %v362_v7  ;;  %513 = vst.msk [vmem:[#allocation2 + $0x19] sm:$0xff] %vm466_vm0, %v434_v14  ;;  %v435_v20 = vsel %vm307_vm4, %v3155_v18, %v2635_v11 }
  0x2f   : > { %v2873_v16 = vpop.eup %2872  ;;  %v2637_v21 = vadd.f32 -1.0, %v2871_v13  ;;  %v364_v22 = vmul.f32 1.442695, %v3236_v8  ;;  %v3256_v26 = vadd.f32 %v3135_v2, %v252_v3  ;;  %514 = vst.msk [vmem:[#allocation2 + $0x21] sm:$0xff] %vm466_vm0, %v435_v20  ;;  %vm317_vm14 = vcmp.gt.f32.partialorder %v3221_v57, 0.0  ;;  %v218_v3 = vld [vmem:[%s3130_s7 + $0xb0] sm:$0xff] }
  0x30   : > { %v2875_v17 = vpop.eup %2874  ;;  %v436_v27 = vsel %vm308_vm5, %v3158_v19, %v2636_v15  ;;  %v2638_v28 = vadd.f32 -1.0, %v2873_v16  ;;  %v366_v18 = vmul.f32 1.442695, %v3239_v9  ;;  %v368_v32 = vmul.f32 1.442695, %v3244_v12 }
  0x31   : > { %v2877_v29 = vpop.eup %2876  ;;  %515 = vst.msk [vmem:[#allocation2 + $0x31] sm:$0xff] %vm466_vm0, %v436_v27  ;;  %v437_v30 = vsel %vm309_vm6, %v3163_v23, %v2637_v21  ;;  %v2639_v31 = vadd.f32 -1.0, %v2875_v17  ;;  %2890 = vpow2.f32 %v364_v22  ;;  %vm318_vm15 = vcmp.gt.f32.partialorder %v3224_v58, 0.0  ;;  %v215_v23 = vld [vmem:[%s3130_s7 + $0x98] sm:$0xff] }
  0x32   : > { %v2879_v19 = vpop.eup %2878  ;;  %516 = vst.msk [vmem:[#allocation2 + $0x39] sm:$0xff] %vm466_vm0, %v437_v30  ;;  %v438_v35 = vsel %vm310_vm7, %v3166_v24, %v2638_v28  ;;  %v2640_v38 = vadd.f32 -1.0, %v2877_v29  ;;  %2892 = vpow2.f32 %v366_v18  ;;  %v370_v42 = vmul.f32 1.442695, %v3256_v26  ;;  %v219_v27 = vld [vmem:[%s3130_s7 + $0xb8] sm:$0xff]  ;;  %v220_v28 = vld [vmem:[%s3130_s7 + $0xc0] sm:$0xff] }
  0x33   : > { %v2881_v39 = vpop.eup %2880  ;;  %517 = vst.msk [vmem:[#allocation2 + $0x49] sm:$0xff] %vm466_vm0, %v438_v35  ;;  %v439_v40 = vsel %vm311_vm8, %v3169_v25, %v2639_v31  ;;  %v2641_v41 = vadd.f32 -1.0, %v2879_v19  ;;  %2894 = vpow2.f32 %v368_v32  ;;  %v253_v48 = vmul.f32 %v3125_v1, %v213_v33  ;;  %v221_v35 = vld [vmem:[%s3130_s7 + $0xc8] sm:$0xff] }
  0x34   : > { %v2883_v43 = vpop.eup %2882  ;;  %518 = vst.msk [vmem:[#allocation2 + $0x51] sm:$0xff] %vm466_vm0, %v439_v40  ;;  %v440_v24 = vsel %vm312_vm9, %v3183_v36, %v2640_v38  ;;  %v2642_v44 = vadd.f32 -1.0, %v2881_v39  ;;  %v254_v49 = vmul.f32 %v3125_v1, %v214_v34  ;;  %2896 = vpow2.f32 %v370_v42  ;;  %v222_v38 = vld [vmem:[%s3130_s7 + $0xd0] sm:$0xff]  ;;  %v223_v42 = vld [vmem:[%s3130_s7 + $0xd8] sm:$0xff] }
  0x35   : > { %v2885_v52 = vpop.eup %2884  ;;  %519 = vst.msk [vmem:[#allocation2 + $0x61] sm:$0xff] %vm466_vm0, %v440_v24  ;;  %v441_v25 = vsel %vm313_vm10, %v3186_v37, %v2641_v41  ;;  %v2643_v53 = vadd.f32 -1.0, %v2883_v43  ;;  %v255_v54 = vmul.f32 %v3125_v1, %v215_v23  ;;  %v611_v36 = vld [vmem:[#allocation2 + $0x19] sm:$0xff]  ;;  %v3300_v59 = vadd.f32 %v3135_v2, %v253_v48 }
  0x36   : > { %520 = vst.msk [vmem:[#allocation2 + $0x69] sm:$0xff] %vm466_vm0, %v441_v25  ;;  %v442_v55 = vsel %vm314_vm11, %v3199_v45, %v2642_v44  ;;  %v2644_v56 = vadd.f32 -1.0, %v2885_v52  ;;  %v3303_v60 = vadd.f32 %v3135_v2, %v254_v49  ;;  %v3305_v37 = vld [vmem:[#allocation2 + $0x18] sm:$0xff]  ;;  %677 = vrot.lane.b32.xlu1 %v611_v36, %s2993_s10  ;;  %v256_v63 = vmul.f32 %v3125_v1, %v216_v50  ;;  %v612_v5 = vld [vmem:[#allocation2 + $0x21] sm:$0xff] }
  0x37   : > { %v2887_v61 = vpop.eup %2886  ;;  %521 = vst.msk [vmem:[#allocation2 + $0x79] sm:$0xff] %vm466_vm0, %v442_v55  ;;  %v443_v62 = vsel %vm315_vm12, %v3202_v46, %v2643_v53  ;;  %v3313_v45 = vadd.f32 %v3135_v2, %v255_v54  ;;  %v257_v0 = vmul.f32 %v3125_v1, %v217_v51  ;;  %579 = vst.msk [vmem:[#allocation3 + $0x10] sm:$0xff] %vm466_vm0, %v3305_v37  ;;  %v372_v10 = vmul.f32 1.442695, %v3300_v59  ;;  %v3325_v11 = vld [vmem:[#allocation2 + $0x20] sm:$0xff]  ;;  %v225_v49 = vld [vmem:[%s3130_s7 + $0xe8] sm:$0xff] }
  0x38   : > { %v2889_v4 = vpop.eup %2888  ;;  %v613_v6 = vld [vmem:[#allocation2 + $0x31] sm:$0xff]  ;;  %522 = vst.msk [vmem:[#allocation2 + $0x81] sm:$0xff] %vm466_vm0, %v443_v62  ;;  %v444_v46 = vsel %vm316_vm13, %v3205_v47, %v2644_v56  ;;  %v2645_v7 = vadd.f32 -1.0, %v2887_v61  ;;  %vm319_vm1 = vcmp.gt.f32.partialorder %v3236_v8, 0.0  ;;  %v374_v14 = vmul.f32 1.442695, %v3303_v60 }
  0x39   : > { %681 = vrot.lane.b32.xlu0 %v613_v6, %s2993_s10  ;;  %523 = vst.msk [vmem:[#allocation2 + $0x91] sm:$0xff] %vm466_vm0, %v444_v46  ;;  %v2646_v13 = vadd.f32 -1.0, %v2889_v4  ;;  %580 = vst.msk [vmem:[#allocation3 + $0x18] sm:$0xff] %vm466_vm0, %v3325_v11  ;;  %2898 = vpow2.f32 %v372_v10  ;;  %v376_v16 = vmul.f32 1.442695, %v3313_v45  ;;  %v3338_v20 = vadd.f32 %v3135_v2, %v256_v63  ;;  %v614_v29 = vld [vmem:[#allocation2 + $0x39] sm:$0xff] }
  0x3a   : > { %v615_v47 = vld [vmem:[#allocation2 + $0x49] sm:$0xff]  ;;  %v445_v15 = vsel %vm317_vm14, %v3221_v57, %v2645_v7  ;;  %679 = vrot.lane.b32.xlu1 %v612_v5, %s2993_s10  ;;  %2900 = vpow2.f32 %v374_v14  ;;  %v3346_v17 = vadd.f32 %v3135_v2, %v257_v0  ;;  %v258_v57 = vmul.f32 %v3125_v1, %v218_v3  ;;  %v3371_v43 = vld [vmem:[#allocation2 + $0x38] sm:$0xff]  ;;  %v224_v48 = vld [vmem:[%s3130_s7 + $0xe0] sm:$0xff] }
  0x3b   : > { %v2891_v21 = vpop.eup %2890  ;;  %524 = vst.msk [vmem:[#allocation2 + $0x99] sm:$0xff] %vm466_vm0, %v445_v15  ;;  %v446_v22 = vsel %vm318_vm15, %v3224_v58, %v2646_v13  ;;  %vm320_vm2 = vcmp.gt.f32.partialorder %v3239_v9, 0.0  ;;  %2902 = vpow2.f32 %v376_v16  ;;  %v378_v58 = vmul.f32 1.442695, %v3338_v20  ;;  %v3354_v31 = vld [vmem:[#allocation2 + $0x30] sm:$0xff]  ;;  %582 = vst.msk [vmem:[#allocation3 + $0x28] sm:$0xff] %vm466_vm0, %v3371_v43 }
  0x3c   : > { %v2893_v18 = vpop.eup %2892  ;;  %525 = vst.msk [vmem:[#allocation2 + $0xa9] sm:$0xff] %vm466_vm0, %v446_v22  ;;  %v2647_v30 = vadd.f32 -1.0, %v2891_v21  ;;  %vm321_vm3 = vcmp.gt.f32.partialorder %v3244_v12, 0.0  ;;  %v380_v34 = vmul.f32 1.442695, %v3346_v17  ;;  %v3360_v19 = vadd.f32 %v3135_v2, %v258_v57  ;;  %581 = vst.msk [vmem:[#allocation3 + $0x20] sm:$0xff] %vm466_vm0, %v3354_v31 }
  0x3d   : > { %v2895_v32 = vpop.eup %2894  ;;  %685 = vrot.lane.b32.xlu0 %v615_v47, %s2993_s10  ;;  %v2648_v33 = vadd.f32 -1.0, %v2893_v18  ;;  %v617_v23 = vld [vmem:[#allocation2 + $0x61] sm:$0xff]  ;;  %2904 = vpow2.f32 %v378_v58  ;;  %v259_v41 = vmul.f32 %v3125_v1, %v219_v27  ;;  %vm322_vm4 = vcmp.gt.f32.partialorder %v3256_v26, 0.0  ;;  %v616_v50 = vld [vmem:[#allocation2 + $0x51] sm:$0xff]  ;;  %v618_v13 = vld [vmem:[#allocation2 + $0x69] sm:$0xff] }
  0x3e   : > { %v447_v39 = vsel %vm319_vm1, %v3236_v8, %v2647_v30  ;;  %v2649_v40 = vadd.f32 -1.0, %v2895_v32  ;;  %v2897_v24 = vpop.eup %2896  ;;  %683 = vrot.lane.b32.xlu1 %v614_v29, %s2993_s10  ;;  %2906 = vpow2.f32 %v380_v34  ;;  %v382_v8 = vmul.f32 1.442695, %v3360_v19  ;;  %v3392_v53 = vld [vmem:[#allocation2 + $0x48] sm:$0xff]  ;;  %v3394_v54 = vld [vmem:[#allocation2 + $0x50] sm:$0xff]  ;;  %v3405_v56 = vld [vmem:[#allocation2 + $0x60] sm:$0xff] }
  0x3f   : > { %526 = vst.msk [vmem:[#allocation2 + $0xb1] sm:$0xff] %vm466_vm0, %v447_v39  ;;  %v448_v44 = vsel %vm320_vm2, %v3239_v9, %v2648_v33  ;;  %v2650_v52 = vadd.f32 -1.0, %v2897_v24  ;;  %v3389_v9 = vadd.f32 %v3135_v2, %v259_v41  ;;  %v260_v25 = vmul.f32 %v3125_v1, %v220_v28  ;;  %583 = vst.msk [vmem:[#allocation3 + $0x30] sm:$0xff] %vm466_vm0, %v3392_v53  ;;  %v3407_v61 = vld [vmem:[#allocation2 + $0x68] sm:$0xff]  ;;  %v3409_v62 = vld [vmem:[#allocation2 + $0x78] sm:$0xff] }
  0x40   : > { %527 = vst.msk [vmem:[#allocation2 + $0xc1] sm:$0xff] %vm466_vm0, %v448_v44  ;;  %v449_v51 = vsel %vm321_vm3, %v3244_v12, %v2649_v40  ;;  %2908 = vpow2.f32 %v382_v8  ;;  %v261_v36 = vmul.f32 %v3125_v1, %v221_v35  ;;  %v262_v55 = vmul.f32 %v3125_v1, %v222_v38  ;;  %584 = vst.msk [vmem:[#allocation3 + $0x38] sm:$0xff] %vm466_vm0, %v3394_v54  ;;  %v619_v63 = vld [vmem:[#allocation2 + $0x79] sm:$0xff]  ;;  %v3438_v7 = vld [vmem:[#allocation2 + $0x90] sm:$0xff] }
  0x41   : > { %689 = vrot.lane.b32.xlu0 %v617_v23, %s2993_s10  ;;  %528 = vst.msk [vmem:[#allocation2 + $0xc9] sm:$0xff] %vm466_vm0, %v449_v51  ;;  %v263_v12 = vmul.f32 %v3125_v1, %v223_v42  ;;  %v450_v0 = vsel %vm322_vm4, %v3256_v26, %v2650_v52  ;;  %v384_v3 = vmul.f32 1.442695, %v3389_v9  ;;  %v3416_v4 = vadd.f32 %v3135_v2, %v260_v25  ;;  %v3436_v46 = vld [vmem:[#allocation2 + $0x80] sm:$0xff]  ;;  %v621_v18 = vld [vmem:[#allocation2 + $0x91] sm:$0xff] }
  0x42   : > { %585 = vst.msk [vmem:[#allocation3 + $0x40] sm:$0xff] %vm466_vm0, %v3405_v56  ;;  %586 = vst.msk [vmem:[#allocation3 + $0x48] sm:$0xff] %vm466_vm0, %v3407_v61  ;;  %687 = vrot.lane.b32.xlu1 %v616_v50, %s2993_s10  ;;  %vm323_vm5 = vcmp.gt.f32.partialorder %v3300_v59, 0.0  ;;  %v3428_v26 = vadd.f32 %v3135_v2, %v261_v36  ;;  %v3431_v5 = vadd.f32 %v3135_v2, %v262_v55  ;;  %v3447_v16 = vld [vmem:[#allocation2 + $0x98] sm:$0xff]  ;;  %vm324_vm6 = vcmp.gt.f32.partialorder %v3303_v60, 0.0  ;;  %v620_v38 = vld [vmem:[#allocation2 + $0x81] sm:$0xff] }
  0x43   : > { %587 = vst.msk [vmem:[#allocation3 + $0x50] sm:$0xff] %vm466_vm0, %v3409_v62  ;;  %529 = vst.msk [vmem:[#allocation2 + $0xd9] sm:$0xff] %vm466_vm0, %v450_v0  ;;  %v3434_v6 = vadd.f32 %v3135_v2, %v263_v12  ;;  %v2899_v10 = vpop.eup %2898  ;;  %2910 = vpow2.f32 %v384_v3  ;;  %v386_v14 = vmul.f32 1.442695, %v3416_v4  ;;  %v264_v47 = vmul.f32 %v3125_v1, %v224_v48  ;;  %v3449_v21 = vld [vmem:[#allocation2 + $0xa8] sm:$0xff]  ;;  %v622_v52 = vld [vmem:[#allocation2 + $0x99] sm:$0xff] }
  0x44   : > { %v265_v15 = vmul.f32 %v3125_v1, %v225_v49  ;;  %588 = vst.msk [vmem:[#allocation3 + $0x58] sm:$0xff] %vm466_vm0, %v3436_v46  ;;  %589 = vst.msk [vmem:[#allocation3 + $0x60] sm:$0xff] %vm466_vm0, %v3438_v7  ;;  %v2901_v22 = vpop.eup %2900  ;;  %v2651_v57 = vadd.f32 -1.0, %v2899_v10  ;;  %vm325_vm7 = vcmp.gt.f32.partialorder %v3313_v45, 0.0  ;;  %v388_v27 = vmul.f32 1.442695, %v3428_v26 }
  0x45   : > { %693 = vrot.lane.b32.xlu0 %v619_v63, %s2993_s10  ;;  %590 = vst.msk [vmem:[#allocation3 + $0x68] sm:$0xff] %vm466_vm0, %v3447_v16  ;;  %591 = vst.msk [vmem:[#allocation3 + $0x70] sm:$0xff] %vm466_vm0, %v3449_v21  ;;  %v2903_v28 = vpop.eup %2902  ;;  %v2652_v29 = vadd.f32 -1.0, %v2901_v22  ;;  %vm326_vm8 = vcmp.gt.f32.partialorder %v3338_v20, 0.0  ;;  %2912 = vpow2.f32 %v386_v14  ;;  %v390_v30 = vmul.f32 1.442695, %v3431_v5 }
  0x46   : > { %691 = vrot.lane.b32.xlu1 %v618_v13, %s2993_s10  ;;  %v451_v58 = vsel %vm323_vm5, %v3300_v59, %v2651_v57  ;;  %v2653_v32 = vadd.f32 -1.0, %v2903_v28  ;;  %2914 = vpow2.f32 %v388_v27  ;;  %v392_v33 = vmul.f32 1.442695, %v3434_v6  ;;  %v3466_v34 = vld [vmem:[#allocation2 + $0xb0] sm:$0xff] }
  0x47   : > { %v2905_v35 = vpop.eup %2904  ;;  %530 = vst.msk [vmem:[#allocation2 + $0xe1] sm:$0xff] %vm466_vm0, %v451_v58  ;;  %v452_v23 = vsel %vm324_vm6, %v3303_v60, %v2652_v29  ;;  %2916 = vpow2.f32 %v390_v30  ;;  %v3473_v39 = vadd.f32 %v3135_v2, %v264_v47  ;;  %v3476_v59 = vadd.f32 %v3135_v2, %v265_v15  ;;  %592 = vst.msk [vmem:[#allocation3 + $0x78] sm:$0xff] %vm466_vm0, %v3466_v34  ;;  %v3486_v42 = vld [vmem:[#allocation2 + $0xc0] sm:$0xff]  ;;  %v623_v44 = vld [vmem:[#allocation2 + $0xa9] sm:$0xff] }
  0x48   : > { %v2907_v40 = vpop.eup %2906  ;;  %531 = vst.msk [vmem:[#allocation2 + $0xf1] sm:$0xff] %vm466_vm0, %v452_v23  ;;  %v453_v41 = vsel %vm325_vm7, %v3313_v45, %v2653_v32  ;;  %v2654_v60 = vadd.f32 -1.0, %v2905_v35  ;;  %vm327_vm9 = vcmp.gt.f32.partialorder %v3346_v17, 0.0  ;;  %2918 = vpow2.f32 %v392_v33  ;;  %v3488_v24 = vld [vmem:[#allocation2 + $0xc8] sm:$0xff]  ;;  %593 = vst.msk [vmem:[#allocation3 + $0x80] sm:$0xff] %vm466_vm0, %v3486_v42  ;;  %v624_v0 = vld [vmem:[#allocation2 + $0xb1] sm:$0xff] }
  0x49   : > { %697 = vrot.lane.b32.xlu0 %v621_v18, %s2993_s10  ;;  %532 = vst.msk [vmem:[#allocation2 + $0xf9] sm:$0xff] %vm466_vm0, %v453_v41  ;;  %v2655_v8 = vadd.f32 -1.0, %v2907_v40  ;;  %v394_v48 = vmul.f32 1.442695, %v3473_v39  ;;  %594 = vst.msk [vmem:[#allocation3 + $0x88] sm:$0xff] %vm466_vm0, %v3488_v24  ;;  %vm328_vm10 = vcmp.gt.f32.partialorder %v3360_v19, 0.0 }
  0x4a   : > { %v2909_v45 = vpop.eup %2908  ;;  %695 = vrot.lane.b32.xlu1 %v620_v38, %s2993_s10  ;;  %v454_v49 = vsel %vm326_vm8, %v3338_v20, %v2654_v60  ;;  %v396_v50 = vmul.f32 1.442695, %v3476_v59  ;;  %v3502_v51 = vld [vmem:[#allocation2 + $0xd8] sm:$0xff]  ;;  %v625_v55 = vld [vmem:[#allocation2 + $0xc1] sm:$0xff]  ;;  %vm329_vm11 = vcmp.gt.f32.partialorder %v3389_v9, 0.0  ;;  %vm330_vm12 = vcmp.gt.f32.partialorder %v3416_v4, 0.0 }
  0x4b   : > { %533 = vst.msk [vmem:[#allocation2 + $0x109] sm:$0xff] %vm466_vm0, %v454_v49  ;;  %v455_v25 = vsel %vm327_vm9, %v3346_v17, %v2655_v8  ;;  %v2656_v36 = vadd.f32 -1.0, %v2909_v45  ;;  %2920 = vpow2.f32 %v394_v48  ;;  %595 = vst.msk [vmem:[#allocation3 + $0x90] sm:$0xff] %vm466_vm0, %v3502_v51  ;;  %vm331_vm13 = vcmp.gt.f32.partialorder %v3428_v26, 0.0  ;;  %v3528_v15 = vld [vmem:[#allocation2 + $0xd9] sm:$0xff]  ;;  %v626_v29 = vld [vmem:[#allocation2 + $0xc9] sm:$0xff] }
  0x4c   : > { %534 = vst.msk [vmem:[#allocation2 + $0x111] sm:$0xff] %vm466_vm0, %v455_v25  ;;  %2922 = vpow2.f32 %v396_v50  ;;  %vm332_vm14 = vcmp.gt.f32.partialorder %v3431_v5, 0.0  ;;  %vm333_vm15 = vcmp.gt.f32.partialorder %v3434_v6, 0.0  ;;  %v226_v33 = vld [vmem:[%s3130_s7 + $0xf0] sm:$0xff]  ;;  %vm334_vm1 = vcmp.gt.f32.partialorder %v3473_v39, 0.0 }
  0x4d   : > { %701 = vrot.lane.b32.xlu0 %v623_v44, %s2993_s10  ;;  %v2911_v20 = vpop.eup %2910  ;;  %v456_v12 = vsel %vm328_vm10, %v3360_v19, %v2656_v36  ;;  %v266_v23 = vmul.f32 %v3125_v1, %v226_v33  ;;  %vm335_vm2 = vcmp.gt.f32.partialorder %v3476_v59, 0.0  ;;  %v802_v33 = vld [vmem:[#allocation2 + $0x2] sm:$0xff]  ;;  %vm962_vm5 = vcmask 97344  }
  0x4e   : > { %699 = vrot.lane.b32.xlu1 %v622_v52, %s2993_s10  ;;  %535 = vst.msk [vmem:[#allocation2 + $0x121] sm:$0xff] %vm466_vm0, %v456_v12  ;;  %v2657_v17 = vadd.f32 -1.0, %v2911_v20  ;;  %v3517_v3 = vld [vmem:[#allocation2 + $0xe0] sm:$0xff]  ;;  %vm2288_vm6 = vcmask 1043456   ;;  %vm1155_vm7 = vcmask 130144   ;;  %vm1348_vm8 = vcmask 162944  }
  0x4f   : > { %v2913_v63 = vpop.eup %2912  ;;  %v3519_v10 = vld [vmem:[#allocation2 + $0xf0] sm:$0xff]  ;;  %596 = vst.msk [vmem:[#allocation3 + $0x98] sm:$0xff] %vm466_vm0, %v3517_v3  ;;  %v3575_v44 = vld [vmem:[#allocation2 + $0xe1] sm:$0xff]  ;;  %v304_v48 = vadd.f32 %v3135_v2, %v266_v23  ;;  %vm1541_vm9 = vcmask 195744   ;;  %vm1735_vm10 = vcmask 228544  }
  0x50   : > { %v2915_v13 = vpop.eup %2914  ;;  %v457_v19 = vsel %vm329_vm11, %v3389_v9, %v2657_v17  ;;  %v2658_v14 = vadd.f32 -1.0, %v2913_v63  ;;  %597 = vst.msk [vmem:[#allocation3 + $0xa0] sm:$0xff] %vm466_vm0, %v3519_v10  ;;  %v3532_v57 = vld [vmem:[#allocation2 + $0xf8] sm:$0xff]  ;;  %v803_v23 = vld [vmem:[#allocation2 + $0xa] sm:$0xff]  ;;  %vm1928_vm11 = vcmask 261344  }
  0x51   : > { %705 = vrot.lane.b32.xlu0 %v625_v55, %s2993_s10  ;;  %v2917_v47 = vpop.eup %2916  ;;  %536 = vst.msk [vmem:[#allocation2 + $0x129] sm:$0xff] %vm466_vm0, %v457_v19  ;;  %v2659_v22 = vadd.f32 -1.0, %v2915_v13  ;;  %598 = vst.msk [vmem:[#allocation3 + $0xa8] sm:$0xff] %vm466_vm0, %v3532_v57  ;;  %v3558_v38 = vld [vmem:[#allocation2 + $0xf1] sm:$0xff]  ;;  %v398_v25 = vmul.f32 1.442695, %v304_v48 }
  0x52   : > { %v2919_v9 = vpop.eup %2918  ;;  %703 = vrot.lane.b32.xlu1 %v624_v0, %s2993_s10  ;;  %v458_v27 = vsel %vm330_vm12, %v3416_v4, %v2658_v14  ;;  %v2660_v28 = vadd.f32 -1.0, %v2917_v47  ;;  %v3541_v18 = vld [vmem:[#allocation2 + $0x108] sm:$0xff]  ;;  %vm336_vm3 = vcmp.gt.f32.partialorder %v304_v48, 0.0  ;;  %vm2121_vm12 = vcmask 294144  }
  0x53   : > { %537 = vst.msk [vmem:[#allocation2 + $0x139] sm:$0xff] %vm466_vm0, %v458_v27  ;;  %v459_v30 = vsel %vm331_vm13, %v3428_v26, %v2659_v22  ;;  %v2661_v58 = vadd.f32 -1.0, %v2919_v9  ;;  %599 = vst.msk [vmem:[#allocation3 + $0xb0] sm:$0xff] %vm466_vm0, %v3541_v18  ;;  %v3555_v32 = vld [vmem:[#allocation2 + $0x110] sm:$0xff]  ;;  %2924 = vpow2.f32 %v398_v25  ;;  %vm2191_vm13 = vcmask 293888  }
  0x54   : > { %538 = vst.msk [vmem:[#allocation2 + $0x141] sm:$0xff] %vm466_vm0, %v459_v30  ;;  %v460_v4 = vsel %vm332_vm14, %v3431_v5, %v2660_v28  ;;  %600 = vst.msk [vmem:[#allocation3 + $0xb8] sm:$0xff] %vm466_vm0, %v3555_v32  ;;  %v227_v5 = vld [vmem:[%s3130_s7 + $0xf8] sm:$0xff]  ;;  %v631_v50 = vld [vmem:[#allocation2 + $0x109] sm:$0xff] }
  0x55   : > { %709 = vrot.lane.b32.xlu0 %v3528_v15, %s2993_s10  ;;  %v2921_v35 = vpop.eup %2920  ;;  %539 = vst.msk [vmem:[#allocation2 + $0x151] sm:$0xff] %vm466_vm0, %v460_v4  ;;  %v461_v26 = vsel %vm333_vm15, %v3434_v6, %v2661_v58  ;;  %v3572_v60 = vld [vmem:[#allocation2 + $0x120] sm:$0xff]  ;;  %v267_v6 = vmul.f32 %v3125_v1, %v227_v5  ;;  %v632_v17 = vld [vmem:[#allocation2 + $0x111] sm:$0xff] }
  0x56   : > { %v2923_v40 = vpop.eup %2922  ;;  %707 = vrot.lane.b32.xlu1 %v626_v29, %s2993_s10  ;;  %540 = vst.msk [vmem:[#allocation2 + $0x159] sm:$0xff] %vm466_vm0, %v461_v26  ;;  %v2662_v41 = vadd.f32 -1.0, %v2921_v35  ;;  %601 = vst.msk [vmem:[#allocation3 + $0xc0] sm:$0xff] %vm466_vm0, %v3572_v60  ;;  %v633_v20 = vld [vmem:[#allocation2 + $0x121] sm:$0xff]  ;;  %v3640_v5 = vld [vmem:[#allocation2 + $0x32] sm:$0xff] }
  0x57   : > { %v2663_v8 = vadd.f32 -1.0, %v2923_v40  ;;  %v305_v49 = vadd.f32 %v3135_v2, %v267_v6  ;;  %v3597_v2 = vld [vmem:[#allocation2 + $0xf9] sm:$0xff]  ;;  %v3643_v40 = vld [vmem:[#allocation2 + $0x22] sm:$0xff]  ;;  %v816_v25 = vld [vmem:[#allocation2 + $0xaa] sm:$0xff] }
  0x58   : > { %v462_v45 = vsel %vm334_vm1, %v3473_v39, %v2662_v41  ;;  %v3588_v52 = vld [vmem:[#allocation2 + $0x128] sm:$0xff]  ;;  %v3635_v26 = vld [vmem:[#allocation2 + $0x1a] sm:$0xff] }
  0x59   : > { %713 = vrot.lane.b32.xlu0 %v3558_v38, %s2993_s10  ;;  %541 = vst.msk [vmem:[#allocation2 + $0x169] sm:$0xff] %vm466_vm0, %v462_v45  ;;  %v463_v1 = vsel %vm335_vm2, %v3476_v59, %v2663_v8  ;;  %602 = vst.msk [vmem:[#allocation3 + $0xc8] sm:$0xff] %vm466_vm0, %v3588_v52  ;;  %v400_v39 = vmul.f32 1.442695, %v305_v49  ;;  %v634_v19 = vld [vmem:[#allocation2 + $0x129] sm:$0xff]  ;;  %vm337_vm4 = vcmp.gt.f32.partialorder %v305_v49, 0.0 }
  0x5a   : > { %711 = vrot.lane.b32.xlu1 %v3575_v44, %s2993_s10  ;;  %542 = vst.msk [vmem:[#allocation2 + $0x171] sm:$0xff] %vm466_vm0, %v463_v1  ;;  %v3595_v36 = vld [vmem:[#allocation2 + $0x138] sm:$0xff]  ;;  %v3647_v41 = vld [vmem:[#allocation2 + $0x4a] sm:$0xff]  ;;  %v810_v8 = vld [vmem:[#allocation2 + $0x62] sm:$0xff] }
  0x5b   : > { %603 = vst.msk [vmem:[#allocation3 + $0xd0] sm:$0xff] %vm466_vm0, %v3595_v36  ;;  %v3602_v59 = vld [vmem:[#allocation2 + $0x140] sm:$0xff]  ;;  %2926 = vpow2.f32 %v400_v39 }
  0x5c   : > { %604 = vst.msk [vmem:[#allocation3 + $0xd8] sm:$0xff] %vm466_vm0, %v3602_v59  ;;  %v3608_v55 = vld [vmem:[#allocation2 + $0x150] sm:$0xff]  ;;  %v635_v63 = vld [vmem:[#allocation2 + $0x139] sm:$0xff]  ;;  %v636_v27 = vld [vmem:[#allocation2 + $0x141] sm:$0xff] }
  0x5d   : > { %717 = vrot.lane.b32.xlu0 %v631_v50, %s2993_s10  ;;  %v3610_v12 = vld [vmem:[#allocation2 + $0x158] sm:$0xff]  ;;  %605 = vst.msk [vmem:[#allocation3 + $0xe0] sm:$0xff] %vm466_vm0, %v3608_v55  ;;  %v2925_v14 = vpop.eup %2924  ;;  %v813_v1 = vld [vmem:[#allocation2 + $0x82] sm:$0xff] }
  0x5e   : > { %715 = vrot.lane.b32.xlu1 %v3597_v2, %s2993_s10  ;;  %606 = vst.msk [vmem:[#allocation3 + $0xe8] sm:$0xff] %vm466_vm0, %v3610_v12  ;;  %v637_v47 = vld [vmem:[#allocation2 + $0x151] sm:$0xff]  ;;  %v2664_v9 = vadd.f32 -1.0, %v2925_v14  ;;  %v638_v4 = vld [vmem:[#allocation2 + $0x159] sm:$0xff] }
  0x5f   : > { %v3651_v6 = vld [vmem:[#allocation2 + $0x3a] sm:$0xff]  ;;  %v814_v50 = vld [vmem:[#allocation2 + $0x92] sm:$0xff] }
  0x60   : > { %v3618_v0 = vld [vmem:[#allocation2 + $0x168] sm:$0xff]  ;;  %v464_v29 = vsel %vm336_vm3, %v304_v48, %v2664_v9  ;;  %v3657_v48 = vld [vmem:[#allocation2 + $0x52] sm:$0xff]  ;;  %v812_v45 = vld [vmem:[#allocation2 + $0x7a] sm:$0xff] }
  0x61   : > { %721 = vrot.lane.b32.xlu0 %v633_v20, %s2993_s10  ;;  %v3620_v13 = vld [vmem:[#allocation2 + $0x170] sm:$0xff]  ;;  %607 = vst.msk [vmem:[#allocation3 + $0xf0] sm:$0xff] %vm466_vm0, %v3618_v0  ;;  %543 = vst.msk [vmem:[#allocation2 + $0x181] sm:$0xff] %vm466_vm0, %v464_v29  ;;  %v815_v39 = vld [vmem:[#allocation2 + $0x9a] sm:$0xff] }
  0x62   : > { %719 = vrot.lane.b32.xlu1 %v632_v17, %s2993_s10  ;;  %608 = vst.msk [vmem:[#allocation3 + $0xf8] sm:$0xff] %vm466_vm0, %v3620_v13  ;;  %v639_v30 = vld [vmem:[#allocation2 + $0x169] sm:$0xff]  ;;  %v640_v35 = vld [vmem:[#allocation2 + $0x171] sm:$0xff] }
  0x63   : > { %v818_v20 = vld [vmem:[#allocation2 + $0xc2] sm:$0xff] }
  0x64   : > { %v3679_v9 = vld [vmem:[#allocation2 + $0xe2] sm:$0xff] }
  0x65   : > { %725 = vrot.lane.b32.xlu0 %v635_v63, %s2993_s10  ;;  %v2927_v22 = vpop.eup %2926  ;;  %v817_v63 = vld [vmem:[#allocation2 + $0xb2] sm:$0xff]  ;;  %v3691_v29 = vld [vmem:[#allocation2 + $0x122] sm:$0xff] }
  0x66   : > { %723 = vrot.lane.b32.xlu1 %v634_v19, %s2993_s10  ;;  %v2665_v28 = vadd.f32 -1.0, %v2927_v22  ;;  %v3670_v19 = vld [vmem:[#allocation2 + $0xda] sm:$0xff]  ;;  %v3676_v22 = vld [vmem:[#allocation2 + $0xf2] sm:$0xff] }
  0x68   : > { %v465_v58 = vsel %vm337_vm4, %v305_v49, %v2665_v28  ;;  %v811_v49 = vld [vmem:[#allocation2 + $0x6a] sm:$0xff]  ;;  %v3687_v28 = vld [vmem:[#allocation2 + $0xfa] sm:$0xff] }
  0x69   : > { %729 = vrot.lane.b32.xlu0 %v637_v47, %s2993_s10  ;;  %544 = vst.msk [vmem:[#allocation2 + $0x189] sm:$0xff] %vm466_vm0, %v465_v58  ;;  %vm769_vm0 = vcmask 64544   ;;  %v819_v47 = vld [vmem:[#allocation2 + $0xca] sm:$0xff]  ;;  %v828_v58 = vld [vmem:[#allocation2 + $0x13a] sm:$0xff] }
  0x6a   : > { %727 = vrot.lane.b32.xlu1 %v636_v27, %s2993_s10  ;;  %v3683_v27 = vld [vmem:[#allocation2 + $0x10a] sm:$0xff] }
  0x6d   : > { %733 = vrot.lane.b32.xlu0 %v639_v30, %s2993_s10  ;;  %v3695_v30 = vld [vmem:[#allocation2 + $0x112] sm:$0xff] }
  0x6e   : > { %731 = vrot.lane.b32.xlu1 %v638_v4, %s2993_s10  ;;  %v3701_v4 = vld [vmem:[#allocation2 + $0x12a] sm:$0xff] }
  0x71   : > { %866 = vrot.lane.b32.xlu0 %v802_v33, %s2994_s11  ;;  %v830_v33 = vld [vmem:[#allocation2 + $0x152] sm:$0xff] }
  0x72   : > { %735 = vrot.lane.b32.xlu1 %v640_v35, %s2993_s10  ;;  %v829_v35 = vld [vmem:[#allocation2 + $0x142] sm:$0xff] }
  0x75   : > { %870 = vrot.lane.b32.xlu0 %v3635_v26, %s2994_s11 }
  0x76   : > { %868 = vrot.lane.b32.xlu1 %v803_v23, %s2994_s11 }
  0x79   : > { %874 = vrot.lane.b32.xlu0 %v3640_v5, %s2994_s11 }
  0x7a   : > { %872 = vrot.lane.b32.xlu1 %v3643_v40, %s2994_s11 }
  0x7d   : > { %878 = vrot.lane.b32.xlu0 %v3647_v41, %s2994_s11 }
  0x7e   : > { %876 = vrot.lane.b32.xlu1 %v3651_v6, %s2994_s11 }
  0x81   : > { %882 = vrot.lane.b32.xlu0 %v810_v8, %s2994_s11  ;;  %v832_v8 = vld [vmem:[#allocation2 + $0x16a] sm:$0xff] }
  0x82   : > { %880 = vrot.lane.b32.xlu1 %v3657_v48, %s2994_s11 }
  0x85   : > { %886 = vrot.lane.b32.xlu0 %v812_v45, %s2994_s11 }
  0x86   : > { %884 = vrot.lane.b32.xlu1 %v811_v49, %s2994_s11  ;;  %v831_v49 = vld [vmem:[#allocation2 + $0x15a] sm:$0xff] }
  0x88   : > { %v674_v17 = vpop.permute.xlu0 %673 }
  0x89   : > { %890 = vrot.lane.b32.xlu0 %v814_v50, %s2994_s11  ;;  %770 = vst.msk [vmem:[#allocation3] sm:$0xff] %vm769_vm0, %v674_v17 }
  0x8a   : > { %888 = vrot.lane.b32.xlu1 %v813_v1, %s2994_s11 }
  0x8d   : > { %894 = vrot.lane.b32.xlu0 %v816_v25, %s2994_s11  ;;  %v833_v25 = vld [vmem:[#allocation2 + $0x172] sm:$0xff] }
  0x8e   : > { %892 = vrot.lane.b32.xlu1 %v815_v39, %s2994_s11 }
  0x91   : > { %898 = vrot.lane.b32.xlu0 %v818_v20, %s2994_s11 }
  0x92   : > { %896 = vrot.lane.b32.xlu1 %v817_v63, %s2994_s11 }
  0x95   : > { %902 = vrot.lane.b32.xlu0 %v3670_v19, %s2994_s11 }
  0x96   : > { %900 = vrot.lane.b32.xlu1 %v819_v47, %s2994_s11 }
  0x99   : > { %906 = vrot.lane.b32.xlu0 %v3676_v22, %s2994_s11 }
  0x9a   : > { %v676_v14 = vpop.permute.xlu0 %675  ;;  %904 = vrot.lane.b32.xlu1 %v3679_v9, %s2994_s11 }
  0x9b   : > { %771 = vst.msk [vmem:[#allocation3 + $0x8] sm:$0xff] %vm769_vm0, %v676_v14 }
  0x9d   : > { %910 = vrot.lane.b32.xlu0 %v3683_v27, %s2994_s11 }
  0x9e   : > { %908 = vrot.lane.b32.xlu1 %v3687_v28, %s2994_s11 }
  0xa1   : > { %914 = vrot.lane.b32.xlu0 %v3691_v29, %s2994_s11 }
  0xa2   : > { %912 = vrot.lane.b32.xlu1 %v3695_v30, %s2994_s11 }
  0xa5   : > { %918 = vrot.lane.b32.xlu0 %v828_v58, %s2994_s11 }
  0xa6   : > { %916 = vrot.lane.b32.xlu1 %v3701_v4, %s2994_s11 }
  0xa8   : > { %v678_v23 = vpop.permute.xlu1 %677 }
  0xa9   : > { %922 = vrot.lane.b32.xlu0 %v830_v33, %s2994_s11  ;;  %772 = vst.msk [vmem:[#allocation3 + $0x10] sm:$0xff] %vm769_vm0, %v678_v23 }
  0xaa   : > { %920 = vrot.lane.b32.xlu1 %v829_v35, %s2994_s11 }
  0xab   : > { %v682_v45 = vpop.permute.xlu0 %681 }
  0xac   : > { %774 = vst.msk [vmem:[#allocation3 + $0x20] sm:$0xff] %vm769_vm0, %v682_v45  ;;  %v680_v50 = vpop.permute.xlu1 %679 }
  0xad   : > { %926 = vrot.lane.b32.xlu0 %v832_v8, %s2994_s11  ;;  %773 = vst.msk [vmem:[#allocation3 + $0x18] sm:$0xff] %vm769_vm0, %v680_v50 }
  0xae   : > { %924 = vrot.lane.b32.xlu1 %v831_v49, %s2994_s11 }
  0xaf   : > { %v686_v1 = vpop.permute.xlu0 %685 }
  0xb0   : > { %776 = vst.msk [vmem:[#allocation3 + $0x30] sm:$0xff] %vm769_vm0, %v686_v1  ;;  %v684_v39 = vpop.permute.xlu1 %683 }
  0xb1   : > { %1059 = vrot.lane.b32.xlu0 %v3305_v37, %s2995_s12  ;;  %775 = vst.msk [vmem:[#allocation3 + $0x28] sm:$0xff] %vm769_vm0, %v684_v39 }
  0xb2   : > { %928 = vrot.lane.b32.xlu1 %v833_v25, %s2994_s11 }
  0xb3   : > { %v690_v20 = vpop.permute.xlu0 %689 }
  0xb4   : > { %778 = vst.msk [vmem:[#allocation3 + $0x40] sm:$0xff] %vm769_vm0, %v690_v20  ;;  %v688_v17 = vpop.permute.xlu1 %687 }
  0xb5   : > { %1063 = vrot.lane.b32.xlu0 %v3354_v31, %s2995_s12  ;;  %777 = vst.msk [vmem:[#allocation3 + $0x38] sm:$0xff] %vm769_vm0, %v688_v17 }
  0xb6   : > { %1061 = vrot.lane.b32.xlu1 %v3325_v11, %s2995_s12 }
  0xb7   : > { %v694_v63 = vpop.permute.xlu0 %693 }
  0xb8   : > { %780 = vst.msk [vmem:[#allocation3 + $0x50] sm:$0xff] %vm769_vm0, %v694_v63  ;;  %v692_v37 = vpop.permute.xlu1 %691  ;;  %v1025_v63 = vld [vmem:[#allocation2 + $0x180] sm:$0xff] }
  0xb9   : > { %1067 = vrot.lane.b32.xlu0 %v3392_v53, %s2995_s12  ;;  %779 = vst.msk [vmem:[#allocation3 + $0x48] sm:$0xff] %vm769_vm0, %v692_v37 }
  0xba   : > { %1065 = vrot.lane.b32.xlu1 %v3371_v43, %s2995_s12 }
  0xbb   : > { %v698_v14 = vpop.permute.xlu0 %697 }
  0xbc   : > { %782 = vst.msk [vmem:[#allocation3 + $0x60] sm:$0xff] %vm769_vm0, %v698_v14  ;;  %v696_v47 = vpop.permute.xlu1 %695 }
  0xbd   : > { %1071 = vrot.lane.b32.xlu0 %v3405_v56, %s2995_s12  ;;  %781 = vst.msk [vmem:[#allocation3 + $0x58] sm:$0xff] %vm769_vm0, %v696_v47  ;;  %v1188_v47 = vld [vmem:[#allocation2 + $0x19] sm:$0xff] }
  0xbe   : > { %1069 = vrot.lane.b32.xlu1 %v3394_v54, %s2995_s12 }
  0xbf   : > { %v702_v11 = vpop.permute.xlu0 %701 }
  0xc0   : > { %784 = vst.msk [vmem:[#allocation3 + $0x70] sm:$0xff] %vm769_vm0, %v702_v11  ;;  %v700_v58 = vpop.permute.xlu1 %699 }
  0xc1   : > { %1075 = vrot.lane.b32.xlu0 %v3409_v62, %s2995_s12  ;;  %783 = vst.msk [vmem:[#allocation3 + $0x68] sm:$0xff] %vm769_vm0, %v700_v58 }
  0xc2   : > { %1073 = vrot.lane.b32.xlu1 %v3407_v61, %s2995_s12 }
  0xc3   : > { %v706_v33 = vpop.permute.xlu0 %705 }
  0xc4   : > { %786 = vst.msk [vmem:[#allocation3 + $0x80] sm:$0xff] %vm769_vm0, %v706_v33  ;;  %v704_v35 = vpop.permute.xlu1 %703  ;;  %v1190_v33 = vld [vmem:[#allocation2 + $0x31] sm:$0xff] }
  0xc5   : > { %1079 = vrot.lane.b32.xlu0 %v3438_v7, %s2995_s12  ;;  %785 = vst.msk [vmem:[#allocation3 + $0x78] sm:$0xff] %vm769_vm0, %v704_v35 }
  0xc6   : > { %1077 = vrot.lane.b32.xlu1 %v3436_v46, %s2995_s12 }
  0xc7   : > { %v710_v23 = vpop.permute.xlu0 %709 }
  0xc8   : > { %788 = vst.msk [vmem:[#allocation3 + $0x90] sm:$0xff] %vm769_vm0, %v710_v23  ;;  %v708_v8 = vpop.permute.xlu1 %707  ;;  %v1189_v23 = vld [vmem:[#allocation2 + $0x21] sm:$0xff] }
  0xc9   : > { %1083 = vrot.lane.b32.xlu0 %v3449_v21, %s2995_s12  ;;  %787 = vst.msk [vmem:[#allocation3 + $0x88] sm:$0xff] %vm769_vm0, %v708_v8 }
  0xca   : > { %1081 = vrot.lane.b32.xlu1 %v3447_v16, %s2995_s12 }
  0xcb   : > { %v714_v45 = vpop.permute.xlu0 %713 }
  0xcc   : > { %790 = vst.msk [vmem:[#allocation3 + $0xa0] sm:$0xff] %vm769_vm0, %v714_v45  ;;  %v712_v7 = vpop.permute.xlu1 %711  ;;  %v1191_v45 = vld [vmem:[#allocation2 + $0x39] sm:$0xff] }
  0xcd   : > { %1087 = vrot.lane.b32.xlu0 %v3486_v42, %s2995_s12  ;;  %789 = vst.msk [vmem:[#allocation3 + $0x98] sm:$0xff] %vm769_vm0, %v712_v7 }
  0xce   : > { %1085 = vrot.lane.b32.xlu1 %v3466_v34, %s2995_s12 }
  0xcf   : > { %v718_v49 = vpop.permute.xlu0 %717 }
  0xd0   : > { %792 = vst.msk [vmem:[#allocation3 + $0xb0] sm:$0xff] %vm769_vm0, %v718_v49  ;;  %v716_v21 = vpop.permute.xlu1 %715 }
  0xd1   : > { %1091 = vrot.lane.b32.xlu0 %v3502_v51, %s2995_s12  ;;  %791 = vst.msk [vmem:[#allocation3 + $0xa8] sm:$0xff] %vm769_vm0, %v716_v21 }
  0xd2   : > { %1089 = vrot.lane.b32.xlu1 %v3488_v24, %s2995_s12 }
  0xd3   : > { %v722_v16 = vpop.permute.xlu0 %721 }
  0xd4   : > { %794 = vst.msk [vmem:[#allocation3 + $0xc0] sm:$0xff] %vm769_vm0, %v722_v16  ;;  %v720_v42 = vpop.permute.xlu1 %719 }
  0xd5   : > { %1095 = vrot.lane.b32.xlu0 %v3519_v10, %s2995_s12  ;;  %793 = vst.msk [vmem:[#allocation3 + $0xb8] sm:$0xff] %vm769_vm0, %v720_v42 }
  0xd6   : > { %1093 = vrot.lane.b32.xlu1 %v3517_v3, %s2995_s12 }
  0xd7   : > { %v726_v34 = vpop.permute.xlu0 %725 }
  0xd8   : > { %796 = vst.msk [vmem:[#allocation3 + $0xd0] sm:$0xff] %vm769_vm0, %v726_v34  ;;  %v724_v51 = vpop.permute.xlu1 %723  ;;  %v2186_v34 = vld [vmem:[%s4374_s3] sm:$0xff] }
  0xd9   : > { %1099 = vrot.lane.b32.xlu0 %v3541_v18, %s2995_s12  ;;  %795 = vst.msk [vmem:[#allocation3 + $0xc8] sm:$0xff] %vm769_vm0, %v724_v51 }
  0xda   : > { %1097 = vrot.lane.b32.xlu1 %v3532_v57, %s2995_s12 }
  0xdb   : > { %v730_v24 = vpop.permute.xlu0 %729 }
  0xdc   : > { %798 = vst.msk [vmem:[#allocation3 + $0xe0] sm:$0xff] %vm769_vm0, %v730_v24  ;;  %v728_v50 = vpop.permute.xlu1 %727 }
  0xdd   : > { %1103 = vrot.lane.b32.xlu0 %v3572_v60, %s2995_s12  ;;  %797 = vst.msk [vmem:[#allocation3 + $0xd8] sm:$0xff] %vm769_vm0, %v728_v50  ;;  %v2188_v50 = vld [vmem:[%s4374_s3 + $0x10] sm:$0xff] }
  0xde   : > { %1101 = vrot.lane.b32.xlu1 %v3555_v32, %s2995_s12 }
  0xdf   : > { %v734_v3 = vpop.permute.xlu0 %733 }
  0xe0   : > { %800 = vst.msk [vmem:[#allocation3 + $0xf0] sm:$0xff] %vm769_vm0, %v734_v3  ;;  %v732_v1 = vpop.permute.xlu1 %731  ;;  %v2189_v3 = vld [vmem:[%s4374_s3 + $0x18] sm:$0xff] }
  0xe1   : > { %1107 = vrot.lane.b32.xlu0 %v3595_v36, %s2995_s12  ;;  %799 = vst.msk [vmem:[#allocation3 + $0xe8] sm:$0xff] %vm769_vm0, %v732_v1 }
  0xe2   : > { %1105 = vrot.lane.b32.xlu1 %v3588_v52, %s2995_s12 }
  0xe3   : > { %v867_v25 = vpop.permute.xlu0 %866 }
  0xe4   : > { %963 = vst.msk [vmem:[#allocation3] sm:$0xff] %vm962_vm5, %v867_v25  ;;  %v736_v39 = vpop.permute.xlu1 %735  ;;  %v2805_v25 = vpack.c.bf16 %v2189_v3, %v2188_v50  ;;  %v1966_v50 = vld [vmem:[#allocation2 + $0x6a] sm:$0xff] }
  0xe5   : > { %1111 = vrot.lane.b32.xlu0 %v3608_v55, %s2995_s12  ;;  %801 = vst.msk [vmem:[#allocation3 + $0xf8] sm:$0xff] %vm769_vm0, %v736_v39 }
  0xe6   : > { %1109 = vrot.lane.b32.xlu1 %v3602_v59, %s2995_s12 }
  0xe7   : > { %v871_v20 = vpop.permute.xlu0 %870 }
  0xe8   : > { %965 = vst.msk [vmem:[#allocation3 + $0x10] sm:$0xff] %vm962_vm5, %v871_v20  ;;  %v869_v17 = vpop.permute.xlu1 %868 }
  0xe9   : > { %1115 = vrot.lane.b32.xlu0 %v3618_v0, %s2995_s12  ;;  %964 = vst.msk [vmem:[#allocation3 + $0x8] sm:$0xff] %vm962_vm5, %v869_v17  ;;  %v1026_v0 = vld [vmem:[#allocation2 + $0x188] sm:$0xff]  ;;  %v2190_v17 = vld [vmem:[%s4374_s3 + $0x20] sm:$0xf] }
  0xea   : > { %1113 = vrot.lane.b32.xlu1 %v3610_v12, %s2995_s12 }
  0xeb   : > { %v875_v37 = vpop.permute.xlu0 %874 }
  0xec   : > { %967 = vst.msk [vmem:[#allocation3 + $0x20] sm:$0xff] %vm962_vm5, %v875_v37  ;;  %v873_v14 = vpop.permute.xlu1 %872 }
  0xed   : > { %1119 = vrot.lane.b32.xlu0 %v1025_v63, %s2995_s12  ;;  %966 = vst.msk [vmem:[#allocation3 + $0x18] sm:$0xff] %vm962_vm5, %v873_v14 }
  0xee   : > { %1117 = vrot.lane.b32.xlu1 %v3620_v13, %s2995_s12 }
  0xef   : > { %v879_v11 = vpop.permute.xlu0 %878 }
  0xf0   : > { %969 = vst.msk [vmem:[#allocation3 + $0x30] sm:$0xff] %vm962_vm5, %v879_v11  ;;  %v877_v58 = vpop.permute.xlu1 %876  ;;  %v1770_v11 = vld [vmem:[#allocation2 + $0x49] sm:$0xff] }
  0xf1   : > { %1252 = vrot.lane.b32.xlu0 %v1188_v47, %s2996_s13  ;;  %968 = vst.msk [vmem:[#allocation3 + $0x28] sm:$0xff] %vm962_vm5, %v877_v58  ;;  %v1786_v58 = vld [vmem:[#allocation2 + $0x109] sm:$0xff] }
  0xf2   : > { %1121 = vrot.lane.b32.xlu1 %v1026_v0, %s2995_s12  ;;  %s188_s12 = sand.u32 1, %s2982_s16  }
  0xf3   : > { %v883_v35 = vpop.permute.xlu0 %882  ;;  %s4329_s29 = scalar_lea.sflag [#allocation5], %s188_s12 }
  0xf4   : > { %971 = vst.msk [vmem:[#allocation3 + $0x40] sm:$0xff] %vm962_vm5, %v883_v35  ;;  %v881_v8 = vpop.permute.xlu1 %880 }
  0xf5   : > { %1256 = vrot.lane.b32.xlu0 %v1190_v33, %s2996_s13  ;;  %970 = vst.msk [vmem:[#allocation3 + $0x38] sm:$0xff] %vm962_vm5, %v881_v8 }
  0xf6   : > { %1254 = vrot.lane.b32.xlu1 %v1189_v23, %s2996_s13  ;;  %v1787_v23 = vld [vmem:[#allocation2 + $0x111] sm:$0xff] }
  0xf7   : > { %v887_v13 = vpop.permute.xlu0 %886 }
  0xf8   : > { %973 = vst.msk [vmem:[#allocation3 + $0x50] sm:$0xff] %vm962_vm5, %v887_v13  ;;  %v885_v7 = vpop.permute.xlu1 %884 }
  0xf9   : > { %1284 = vrot.lane.b32.xlu0 %v3528_v15, %s2996_s13  ;;  %972 = vst.msk [vmem:[#allocation3 + $0x48] sm:$0xff] %vm962_vm5, %v885_v7 }
  0xfa   : > { %1258 = vrot.lane.b32.xlu1 %v1191_v45, %s2996_s13 }
  0xfb   : > { %v891_v49 = vpop.permute.xlu0 %890 }
  0xfc   : > { %975 = vst.msk [vmem:[#allocation3 + $0x60] sm:$0xff] %vm962_vm5, %v891_v49  ;;  %v889_v21 = vpop.permute.xlu1 %888 }
  0xfd   : > { %1445 = vrot.lane.b32.xlu0 %v3635_v26, %s2997_s14  ;;  %974 = vst.msk [vmem:[#allocation3 + $0x58] sm:$0xff] %vm962_vm5, %v889_v21 }
  0xfe   : > { %1286 = vrot.lane.b32.xlu1 %v3575_v44, %s2996_s13 }
  0xff   : > { %v895_v16 = vpop.permute.xlu0 %894 }
 0x100   : > { %977 = vst.msk [vmem:[#allocation3 + $0x70] sm:$0xff] %vm962_vm5, %v895_v16  ;;  %v893_v15 = vpop.permute.xlu1 %892 }
 0x101   : > { %1447 = vrot.lane.b32.xlu0 %v3643_v40, %s2997_s14  ;;  %976 = vst.msk [vmem:[#allocation3 + $0x68] sm:$0xff] %vm962_vm5, %v893_v15 }
 0x102   : > { %1477 = vrot.lane.b32.xlu1 %v3670_v19, %s2997_s14 }
 0x103   : > { %v899_v42 = vpop.permute.xlu0 %898 }
 0x104   : > { %979 = vst.msk [vmem:[#allocation3 + $0x80] sm:$0xff] %vm962_vm5, %v899_v42  ;;  %v897_v26 = vpop.permute.xlu1 %896 }
 0x105   : > { %1639 = vrot.lane.b32.xlu0 %v3354_v31, %s2998_s20  ;;  %978 = vst.msk [vmem:[#allocation3 + $0x78] sm:$0xff] %vm962_vm5, %v897_v26 }
 0x106   : > { %1479 = vrot.lane.b32.xlu1 %v3679_v9, %s2997_s14 }
 0x107   : > { %v903_v44 = vpop.permute.xlu0 %902 }
 0x108   : > { %981 = vst.msk [vmem:[#allocation3 + $0x90] sm:$0xff] %vm962_vm5, %v903_v44  ;;  %v901_v40 = vpop.permute.xlu1 %900  ;;  %v1772_v44 = vld [vmem:[#allocation2 + $0x61] sm:$0xff] }
 0x109   : > { %1641 = vrot.lane.b32.xlu0 %v3371_v43, %s2998_s20  ;;  %980 = vst.msk [vmem:[#allocation3 + $0x88] sm:$0xff] %vm962_vm5, %v901_v40 }
 0x10a   : > { %1671 = vrot.lane.b32.xlu1 %v3519_v10, %s2998_s20 }
 0x10b   : > { %v907_v19 = vpop.permute.xlu0 %906 }
 0x10c   : > { %983 = vst.msk [vmem:[#allocation3 + $0xa0] sm:$0xff] %vm962_vm5, %v907_v19  ;;  %v905_v31 = vpop.permute.xlu1 %904  ;;  %v1788_v19 = vld [vmem:[#allocation2 + $0x121] sm:$0xff] }
 0x10d   : > { %1832 = vrot.lane.b32.xlu0 %v1190_v33, %s2999_s22  ;;  %982 = vst.msk [vmem:[#allocation3 + $0x98] sm:$0xff] %vm962_vm5, %v905_v31 }
 0x10e   : > { %1673 = vrot.lane.b32.xlu1 %v3532_v57, %s2998_s20  ;;  %v2187_v57 = vld [vmem:[%s4374_s3 + $0x8] sm:$0xff] }
 0x10f   : > { %v911_v9 = vpop.permute.xlu0 %910  ;;  %v2801_v24 = vpack.c.bf16 %v2187_v57, %v2186_v34 }
 0x110   : > { %985 = vst.msk [vmem:[#allocation3 + $0xb0] sm:$0xff] %vm962_vm5, %v911_v9  ;;  %v909_v43 = vpop.permute.xlu1 %908 }
 0x111   : > { %1288 = vrot.lane.b32.xlu0 %v3558_v38, %s2996_s13  ;;  %984 = vst.msk [vmem:[#allocation3 + $0xa8] sm:$0xff] %vm962_vm5, %v909_v43  ;;  %2802 = vmatprep.subr.bf16.mxu0 %v2801_v24 }
 0x112   : > { %1864 = vrot.lane.b32.xlu1 %v3558_v38, %s2999_s22  ;;  %2809 = vmatprep.subr.bf16.mxu1 %v2801_v24 }
 0x113   : > { %v915_v10 = vpop.permute.xlu0 %914  ;;  %2804 = vmatpush3.bf16.msra.mxu0 %v2801_v24  ;;  %2812 = vmatpush3.bf16.msra.mxu1 %v2801_v24 }
 0x114   : > { %987 = vst.msk [vmem:[#allocation3 + $0xc0] sm:$0xff] %vm962_vm5, %v915_v10  ;;  %v913_v51 = vpop.permute.xlu1 %912  ;;  %2806 = vmatprep.subr.bf16.mxu0 %v2805_v25  ;;  %2810 = vmatprep.subr.bf16.mxu1 %v2805_v25  ;;  %v1789_v10 = vld [vmem:[#allocation2 + $0x129] sm:$0xff] }
 0x115   : > { %1866 = vrot.lane.b32.xlu0 %v3597_v2, %s2999_s22  ;;  %986 = vst.msk [vmem:[#allocation3 + $0xb8] sm:$0xff] %vm962_vm5, %v913_v51 }
 0x116   : > { %1834 = vrot.lane.b32.xlu1 %v1191_v45, %s2999_s22 }
 0x117   : > { %v919_v38 = vpop.permute.xlu0 %918  ;;  %2808 = vmatpush3.bf16.msra.mxu0 %v2805_v25  ;;  %2813 = vmatpush3.bf16.msra.mxu1 %v2805_v25 }
 0x118   : > { %989 = vst.msk [vmem:[#allocation3 + $0xd0] sm:$0xff] %vm962_vm5, %v919_v38  ;;  %v917_v1 = vpop.permute.xlu1 %916  ;;  %2751 = vmatprep.subr.msk.mxu0 %vm2288_vm6, %v2190_v17  ;;  %2811 = vmatprep.subr.msk.mxu1 %vm2288_vm6, %v2190_v17 }
 0x119   : > { %2057 = vrot.lane.b32.xlu0 %v3676_v22, %s3000_s8  ;;  %988 = vst.msk [vmem:[#allocation3 + $0xc8] sm:$0xff] %vm962_vm5, %v917_v1 }
 0x11a   : > { %2025 = vrot.lane.b32.xlu1 %v3640_v5, %s3000_s8 }
 0x11b   : > { %v923_v39 = vpop.permute.xlu0 %922  ;;  %2752 = vmatpush3.msk.msra.mxu0 %vm2288_vm6, %v2190_v17  ;;  %2814 = vmatpush3.msk.msra.mxu1 %vm2288_vm6, %v2190_v17  ;;  %v1404_v17 = vld [vmem:[#allocation2 + $0x12a] sm:$0xff] }
 0x11c   : > { %991 = vst.msk [vmem:[#allocation3 + $0xe0] sm:$0xff] %vm962_vm5, %v923_v39  ;;  %v921_v20 = vpop.permute.xlu1 %920 }
 0x11d   : > { %1449 = vrot.lane.b32.xlu0 %v3640_v5, %s2997_s14  ;;  %990 = vst.msk [vmem:[#allocation3 + $0xd8] sm:$0xff] %vm962_vm5, %v921_v20 }
 0x11e   : > { %1290 = vrot.lane.b32.xlu1 %v3597_v2, %s2996_s13 }
 0x11f   : > { %v927_v63 = vpop.permute.xlu0 %926 }
 0x120   : > { %993 = vst.msk [vmem:[#allocation3 + $0xf0] sm:$0xff] %vm962_vm5, %v927_v63  ;;  %v925_v37 = vpop.permute.xlu1 %924 }
 0x121   : > { %2027 = vrot.lane.b32.xlu0 %v3651_v6, %s3000_s8  ;;  %992 = vst.msk [vmem:[#allocation3 + $0xe8] sm:$0xff] %vm962_vm5, %v925_v37 }
 0x122   : > { %1481 = vrot.lane.b32.xlu1 %v3676_v22, %s2997_s14 }
 0x123   : > { %v1060_v5 = vpop.permute.xlu0 %1059 }
 0x124   : > { %1156 = vst.msk [vmem:[#allocation3] sm:$0xff] %vm1155_vm7, %v1060_v5  ;;  %v929_v2 = vpop.permute.xlu1 %928 }
 0x125   : > { %1451 = vrot.lane.b32.xlu0 %v3651_v6, %s2997_s14  ;;  %994 = vst.msk [vmem:[#allocation3 + $0xf8] sm:$0xff] %vm962_vm5, %v929_v2 }
 0x126   : > { %2059 = vrot.lane.b32.xlu1 %v3687_v28, %s3000_s8 }
 0x127   : > { %v1064_v14 = vpop.permute.xlu0 %1063 }
 0x128   : > { %1158 = vst.msk [vmem:[#allocation3 + $0x10] sm:$0xff] %vm1155_vm7, %v1064_v14  ;;  %v1062_v47 = vpop.permute.xlu1 %1061 }
 0x129   : > { %1643 = vrot.lane.b32.xlu0 %v3392_v53, %s2998_s20  ;;  %1157 = vst.msk [vmem:[#allocation3 + $0x8] sm:$0xff] %vm1155_vm7, %v1062_v47 }
 0x12a   : > { %1483 = vrot.lane.b32.xlu1 %v3687_v28, %s2997_s14 }
 0x12b   : > { %v1068_v22 = vpop.permute.xlu0 %1067 }
 0x12c   : > { %1160 = vst.msk [vmem:[#allocation3 + $0x20] sm:$0xff] %vm1155_vm7, %v1068_v22  ;;  %v1066_v6 = vpop.permute.xlu1 %1065 }
 0x12d   : > { %1645 = vrot.lane.b32.xlu0 %v3394_v54, %s2998_s20  ;;  %1159 = vst.msk [vmem:[#allocation3 + $0x18] sm:$0xff] %vm1155_vm7, %v1066_v6 }
 0x12e   : > { %1675 = vrot.lane.b32.xlu1 %v3541_v18, %s2998_s20  ;;  %v1771_v18 = vld [vmem:[#allocation2 + $0x51] sm:$0xff] }
 0x12f   : > { %v1072_v0 = vpop.permute.xlu0 %1071 }
 0x130   : > { %1162 = vst.msk [vmem:[#allocation3 + $0x30] sm:$0xff] %vm1155_vm7, %v1072_v0  ;;  %v1070_v53 = vpop.permute.xlu1 %1069 }
 0x131   : > { %1836 = vrot.lane.b32.xlu0 %v1770_v11, %s2999_s22  ;;  %1161 = vst.msk [vmem:[#allocation3 + $0x28] sm:$0xff] %vm1155_vm7, %v1070_v53 }
 0x132   : > { %1677 = vrot.lane.b32.xlu1 %v3555_v32, %s2998_s20 }
 0x133   : > { %v1076_v28 = vpop.permute.xlu0 %1075 }
 0x134   : > { %1164 = vst.msk [vmem:[#allocation3 + $0x40] sm:$0xff] %vm1155_vm7, %v1076_v28  ;;  %v1074_v54 = vpop.permute.xlu1 %1073  ;;  %v1983_v28 = vld [vmem:[#allocation2 + $0x13a] sm:$0xff] }
 0x135   : > { %1260 = vrot.lane.b32.xlu0 %v1770_v11, %s2996_s13  ;;  %1163 = vst.msk [vmem:[#allocation3 + $0x38] sm:$0xff] %vm1155_vm7, %v1074_v54  ;;  %v1791_v11 = vld [vmem:[#allocation2 + $0x141] sm:$0xff] }
 0x136   : > { %1868 = vrot.lane.b32.xlu1 %v1786_v58, %s2999_s22 }
 0x137   : > { %v1080_v33 = vpop.permute.xlu0 %1079 }
 0x138   : > { %1166 = vst.msk [vmem:[#allocation3 + $0x50] sm:$0xff] %vm1155_vm7, %v1080_v33  ;;  %v1078_v35 = vpop.permute.xlu1 %1077 }
 0x139   : > { %1838 = vrot.lane.b32.xlu0 %v1771_v18, %s2999_s22  ;;  %1165 = vst.msk [vmem:[#allocation3 + $0x48] sm:$0xff] %vm1155_vm7, %v1078_v35 }
 0x13a   : > { %1292 = vrot.lane.b32.xlu1 %v1786_v58, %s2996_s13 }
 0x13b   : > { %v1084_v32 = vpop.permute.xlu0 %1083 }
 0x13c   : > { %1168 = vst.msk [vmem:[#allocation3 + $0x60] sm:$0xff] %vm1155_vm7, %v1084_v32  ;;  %v1082_v8 = vpop.permute.xlu1 %1081  ;;  %v1968_v32 = vld [vmem:[#allocation2 + $0x82] sm:$0xff] }
 0x13d   : > { %2029 = vrot.lane.b32.xlu0 %v3647_v41, %s3000_s8  ;;  %1167 = vst.msk [vmem:[#allocation3 + $0x58] sm:$0xff] %vm1155_vm7, %v1082_v8 }
 0x13e   : > { %1870 = vrot.lane.b32.xlu1 %v1787_v23, %s2999_s22 }
 0x13f   : > { %v1088_v13 = vpop.permute.xlu0 %1087 }
 0x140   : > { %1170 = vst.msk [vmem:[#allocation3 + $0x70] sm:$0xff] %vm1155_vm7, %v1088_v13  ;;  %v1086_v45 = vpop.permute.xlu1 %1085 }
 0x141   : > { %1262 = vrot.lane.b32.xlu0 %v1771_v18, %s2996_s13  ;;  %1169 = vst.msk [vmem:[#allocation3 + $0x68] sm:$0xff] %vm1155_vm7, %v1086_v45 }
 0x142   : > { %2061 = vrot.lane.b32.xlu1 %v3683_v27, %s3000_s8 }
 0x143   : > { %v1092_v7 = vpop.permute.xlu0 %1091 }
 0x144   : > { %1172 = vst.msk [vmem:[#allocation3 + $0x80] sm:$0xff] %vm1155_vm7, %v1092_v7  ;;  %v1090_v49 = vpop.permute.xlu1 %1089  ;;  %v1984_v7 = vld [vmem:[#allocation2 + $0x142] sm:$0xff] }
 0x145   : > { %1453 = vrot.lane.b32.xlu0 %v3647_v41, %s2997_s14  ;;  %1171 = vst.msk [vmem:[#allocation3 + $0x78] sm:$0xff] %vm1155_vm7, %v1090_v49 }
 0x146   : > { %1294 = vrot.lane.b32.xlu1 %v1787_v23, %s2996_s13 }
 0x147   : > { %v1096_v21 = vpop.permute.xlu0 %1095 }
 0x148   : > { %1174 = vst.msk [vmem:[#allocation3 + $0x90] sm:$0xff] %vm1155_vm7, %v1096_v21  ;;  %v1094_v16 = vpop.permute.xlu1 %1093  ;;  %v1583_v21 = vld [vmem:[#allocation2 + $0x90] sm:$0xff] }
 0x149   : > { %2031 = vrot.lane.b32.xlu0 %v3657_v48, %s3000_s8  ;;  %1173 = vst.msk [vmem:[#allocation3 + $0x88] sm:$0xff] %vm1155_vm7, %v1094_v16 }
 0x14a   : > { %1485 = vrot.lane.b32.xlu1 %v3683_v27, %s2997_s14 }
 0x14b   : > { %v1100_v15 = vpop.permute.xlu0 %1099 }
 0x14c   : > { %1176 = vst.msk [vmem:[#allocation3 + $0xa0] sm:$0xff] %vm1155_vm7, %v1100_v15  ;;  %v1098_v41 = vpop.permute.xlu1 %1097 }
 0x14d   : > { %1455 = vrot.lane.b32.xlu0 %v3657_v48, %s2997_s14  ;;  %1175 = vst.msk [vmem:[#allocation3 + $0x98] sm:$0xff] %vm1155_vm7, %v1098_v41 }
 0x14e   : > { %2063 = vrot.lane.b32.xlu1 %v3695_v30, %s3000_s8 }
 0x14f   : > { %v1104_v42 = vpop.permute.xlu0 %1103 }
 0x150   : > { %1178 = vst.msk [vmem:[#allocation3 + $0xb0] sm:$0xff] %vm1155_vm7, %v1104_v42  ;;  %v1102_v26 = vpop.permute.xlu1 %1101  ;;  %v1584_v42 = vld [vmem:[#allocation2 + $0x98] sm:$0xff] }
 0x151   : > { %1647 = vrot.lane.b32.xlu0 %v3405_v56, %s2998_s20  ;;  %1177 = vst.msk [vmem:[#allocation3 + $0xa8] sm:$0xff] %vm1155_vm7, %v1102_v26 }
 0x152   : > { %1487 = vrot.lane.b32.xlu1 %v3695_v30, %s2997_s14 }
 0x153   : > { %v1108_v27 = vpop.permute.xlu0 %1107 }
 0x154   : > { %1180 = vst.msk [vmem:[#allocation3 + $0xc0] sm:$0xff] %vm1155_vm7, %v1108_v27  ;;  %v1106_v48 = vpop.permute.xlu1 %1105 }
 0x155   : > { %1649 = vrot.lane.b32.xlu0 %v3407_v61, %s2998_s20  ;;  %1179 = vst.msk [vmem:[#allocation3 + $0xb8] sm:$0xff] %vm1155_vm7, %v1106_v48  ;;  %v1776_v48 = vld [vmem:[#allocation2 + $0x91] sm:$0xff] }
 0x156   : > { %1679 = vrot.lane.b32.xlu1 %v3572_v60, %s2998_s20  ;;  %v1773_v60 = vld [vmem:[#allocation2 + $0x69] sm:$0xff] }
 0x157   : > { %v1112_v40 = vpop.permute.xlu0 %1111 }
 0x158   : > { %1182 = vst.msk [vmem:[#allocation3 + $0xd0] sm:$0xff] %vm1155_vm7, %v1112_v40  ;;  %v1110_v56 = vpop.permute.xlu1 %1109 }
 0x159   : > { %1840 = vrot.lane.b32.xlu0 %v1772_v44, %s2999_s22  ;;  %1181 = vst.msk [vmem:[#allocation3 + $0xc8] sm:$0xff] %vm1155_vm7, %v1110_v56 }
 0x15a   : > { %1681 = vrot.lane.b32.xlu1 %v3588_v52, %s2998_s20  ;;  %v1965_v52 = vld [vmem:[#allocation2 + $0x62] sm:$0xff] }
 0x15b   : > { %v1116_v30 = vpop.permute.xlu0 %1115 }
 0x15c   : > { %1184 = vst.msk [vmem:[#allocation3 + $0xe0] sm:$0xff] %vm1155_vm7, %v1116_v30  ;;  %v1114_v61 = vpop.permute.xlu1 %1113  ;;  %v1792_v30 = vld [vmem:[#allocation2 + $0x151] sm:$0xff] }
 0x15d   : > { %1264 = vrot.lane.b32.xlu0 %v1772_v44, %s2996_s13  ;;  %1183 = vst.msk [vmem:[#allocation3 + $0xd8] sm:$0xff] %vm1155_vm7, %v1114_v61 }
 0x15e   : > { %1872 = vrot.lane.b32.xlu1 %v1788_v19, %s2999_s22 }
 0x15f   : > { %v1120_v31 = vpop.permute.xlu0 %1119 }
 0x160   : > { %1186 = vst.msk [vmem:[#allocation3 + $0xf0] sm:$0xff] %vm1155_vm7, %v1120_v31  ;;  %v1118_v9 = vpop.permute.xlu1 %1117 }
 0x161   : > { %1842 = vrot.lane.b32.xlu0 %v1773_v60, %s2999_s22  ;;  %1185 = vst.msk [vmem:[#allocation3 + $0xe8] sm:$0xff] %vm1155_vm7, %v1118_v9  ;;  %v1793_v9 = vld [vmem:[#allocation2 + $0x159] sm:$0xff] }
 0x162   : > { %1296 = vrot.lane.b32.xlu1 %v1788_v19, %s2996_s13 }
 0x163   : > { %v1253_v43 = vpop.permute.xlu0 %1252 }
 0x164   : > { %1349 = vst.msk [vmem:[#allocation3] sm:$0xff] %vm1348_vm8, %v1253_v43  ;;  %v1122_v34 = vpop.permute.xlu1 %1121 }
 0x165   : > { %2033 = vrot.lane.b32.xlu0 %v1965_v52, %s3000_s8  ;;  %1187 = vst.msk [vmem:[#allocation3 + $0xf8] sm:$0xff] %vm1155_vm7, %v1122_v34  ;;  %v1985_v34 = vld [vmem:[#allocation2 + $0x152] sm:$0xff] }
 0x166   : > { %1874 = vrot.lane.b32.xlu1 %v1789_v10, %s2999_s22 }
 0x167   : > { %v1257_v57 = vpop.permute.xlu0 %1256 }
 0x168   : > { %1351 = vst.msk [vmem:[#allocation3 + $0x10] sm:$0xff] %vm1348_vm8, %v1257_v57  ;;  %v1255_v51 = vpop.permute.xlu1 %1254 }
 0x169   : > { %1266 = vrot.lane.b32.xlu0 %v1773_v60, %s2996_s13  ;;  %1350 = vst.msk [vmem:[#allocation3 + $0x8] sm:$0xff] %vm1348_vm8, %v1255_v51 }
 0x16a   : > { %2065 = vrot.lane.b32.xlu1 %v3691_v29, %s3000_s8 }
 0x16b   : > { %v1285_v24 = vpop.permute.xlu0 %1284 }
 0x16c   : > { %1365 = vst.msk [vmem:[#allocation3 + $0x80] sm:$0xff] %vm1348_vm8, %v1285_v24  ;;  %v1259_v38 = vpop.permute.xlu1 %1258 }
 0x16d   : > { %1457 = vrot.lane.b32.xlu0 %v1965_v52, %s2997_s14  ;;  %1352 = vst.msk [vmem:[#allocation3 + $0x18] sm:$0xff] %vm1348_vm8, %v1259_v38 }
 0x16e   : > { %1298 = vrot.lane.b32.xlu1 %v1789_v10, %s2996_s13 }
 0x16f   : > { %v1446_v3 = vpop.permute.xlu0 %1445 }
 0x170   : > { %1542 = vst.msk [vmem:[#allocation3] sm:$0xff] %vm1541_vm9, %v1446_v3  ;;  %v1287_v1 = vpop.permute.xlu1 %1286 }
 0x171   : > { %2035 = vrot.lane.b32.xlu0 %v1966_v50, %s3000_s8  ;;  %1366 = vst.msk [vmem:[#allocation3 + $0x88] sm:$0xff] %vm1348_vm8, %v1287_v1 }
 0x172   : > { %1489 = vrot.lane.b32.xlu1 %v3691_v29, %s2997_s14 }
 0x173   : > { %v1448_v25 = vpop.permute.xlu0 %1447 }
 0x174   : > { %1543 = vst.msk [vmem:[#allocation3 + $0x8] sm:$0xff] %vm1541_vm9, %v1448_v25  ;;  %v1478_v39 = vpop.permute.xlu1 %1477 }
 0x175   : > { %1459 = vrot.lane.b32.xlu0 %v1966_v50, %s2997_s14  ;;  %1558 = vst.msk [vmem:[#allocation3 + $0x80] sm:$0xff] %vm1541_vm9, %v1478_v39  ;;  %v1970_v50 = vld [vmem:[#allocation2 + $0x9a] sm:$0xff] }
 0x176   : > { %2067 = vrot.lane.b32.xlu1 %v3701_v4, %s3000_s8  ;;  %v1774_v4 = vld [vmem:[#allocation2 + $0x79] sm:$0xff] }
 0x177   : > { %v1640_v20 = vpop.permute.xlu0 %1639 }
 0x178   : > { %1736 = vst.msk [vmem:[#allocation3] sm:$0xff] %vm1735_vm10, %v1640_v20  ;;  %v1480_v63 = vpop.permute.xlu1 %1479  ;;  %v1986_v20 = vld [vmem:[#allocation2 + $0x15a] sm:$0xff] }
 0x179   : > { %1651 = vrot.lane.b32.xlu0 %v3409_v62, %s2998_s20  ;;  %1559 = vst.msk [vmem:[#allocation3 + $0x88] sm:$0xff] %vm1541_vm9, %v1480_v63  ;;  %v1585_v63 = vld [vmem:[#allocation2 + $0xa8] sm:$0xff] }
 0x17a   : > { %1491 = vrot.lane.b32.xlu1 %v1404_v17, %s2997_s14 }
 0x17b   : > { %v1642_v29 = vpop.permute.xlu0 %1641 }
 0x17c   : > { %1737 = vst.msk [vmem:[#allocation3 + $0x8] sm:$0xff] %vm1735_vm10, %v1642_v29  ;;  %v1672_v37 = vpop.permute.xlu1 %1671 }
 0x17d   : > { %1653 = vrot.lane.b32.xlu0 %v3436_v46, %s2998_s20  ;;  %1752 = vst.msk [vmem:[#allocation3 + $0x80] sm:$0xff] %vm1735_vm10, %v1672_v37  ;;  %v1790_v46 = vld [vmem:[#allocation2 + $0x139] sm:$0xff] }
 0x17e   : > { %1683 = vrot.lane.b32.xlu1 %v3595_v36, %s2998_s20  ;;  %v1775_v36 = vld [vmem:[#allocation2 + $0x81] sm:$0xff] }
 0x17f   : > { %v1833_v5 = vpop.permute.xlu0 %1832 }
 0x180   : > { %1929 = vst.msk [vmem:[#allocation3] sm:$0xff] %vm1928_vm11, %v1833_v5  ;;  %v1674_v62 = vpop.permute.xlu1 %1673  ;;  %v1586_v5 = vld [vmem:[#allocation2 + $0xb0] sm:$0xff] }
 0x181   : > { %1844 = vrot.lane.b32.xlu0 %v1774_v4, %s2999_s22  ;;  %1753 = vst.msk [vmem:[#allocation3 + $0x88] sm:$0xff] %vm1735_vm10, %v1674_v62 }
 0x182   : > { %1685 = vrot.lane.b32.xlu1 %v3602_v59, %s2998_s20  ;;  %v1967_v59 = vld [vmem:[#allocation2 + $0x7a] sm:$0xff] }
 0x183   : > { %v1289_v2 = vpop.permute.xlu0 %1288 }
 0x184   : > { %1367 = vst.msk [vmem:[#allocation3 + $0x90] sm:$0xff] %vm1348_vm8, %v1289_v2  ;;  %v1865_v14 = vpop.permute.xlu1 %1864  ;;  %v1601_v2 = vld [vmem:[#allocation2 + $0x168] sm:$0xff] }
 0x185   : > { %1268 = vrot.lane.b32.xlu0 %v1774_v4, %s2996_s13  ;;  %1945 = vst.msk [vmem:[#allocation3 + $0x80] sm:$0xff] %vm1928_vm11, %v1865_v14  ;;  %v1778_v14 = vld [vmem:[#allocation2 + $0xa9] sm:$0xff] }
 0x186   : > { %1876 = vrot.lane.b32.xlu1 %v1790_v46, %s2999_s22 }
 0x187   : > { %v1867_v47 = vpop.permute.xlu0 %1866 }
 0x188   : > { %1946 = vst.msk [vmem:[#allocation3 + $0x88] sm:$0xff] %vm1928_vm11, %v1867_v47  ;;  %v1835_v22 = vpop.permute.xlu1 %1834  ;;  %v1602_v47 = vld [vmem:[#allocation2 + $0x170] sm:$0xff] }
 0x189   : > { %1846 = vrot.lane.b32.xlu0 %v1775_v36, %s2999_s22  ;;  %1930 = vst.msk [vmem:[#allocation3 + $0x8] sm:$0xff] %vm1928_vm11, %v1835_v22 }
 0x18a   : > { %1300 = vrot.lane.b32.xlu1 %v1790_v46, %s2996_s13 }
 0x18b   : > { %v2058_v6 = vpop.permute.xlu0 %2057 }
 0x18c   : > { %2138 = vst.msk [vmem:[#allocation3 + $0x80] sm:$0xff] %vm2121_vm12, %v2058_v6  ;;  %v2026_v0 = vpop.permute.xlu1 %2025  ;;  %v1794_v6 = vld [vmem:[#allocation2 + $0x169] sm:$0xff] }
 0x18d   : > { %2037 = vrot.lane.b32.xlu0 %v1967_v59, %s3000_s8  ;;  %2122 = vst.msk [vmem:[#allocation3] sm:$0xff] %vm2121_vm12, %v2026_v0  ;;  %v1779_v0 = vld [vmem:[#allocation2 + $0xb1] sm:$0xff] }
 0x18e   : > { %1878 = vrot.lane.b32.xlu1 %v1791_v11, %s2999_s22 }
 0x18f   : > { %v1450_v53 = vpop.permute.xlu0 %1449 }
 0x190   : > { %1544 = vst.msk [vmem:[#allocation3 + $0x10] sm:$0xff] %vm1541_vm9, %v1450_v53  ;;  %v1291_v58 = vpop.permute.xlu1 %1290 }
 0x191   : > { %1270 = vrot.lane.b32.xlu0 %v1775_v36, %s2996_s13  ;;  %1368 = vst.msk [vmem:[#allocation3 + $0x98] sm:$0xff] %vm1348_vm8, %v1291_v58  ;;  %v1971_v58 = vld [vmem:[#allocation2 + $0xaa] sm:$0xff] }
 0x192   : > { %2069 = vrot.lane.b32.xlu1 %v1983_v28, %s3000_s8 }
 0x193   : > { %v2028_v54 = vpop.permute.xlu0 %2027  ;;  %v2170_v18 = vld [vmem:[#allocation3 + $0x80] sm:$0xff] }
 0x194   : > { %2123 = vst.msk [vmem:[#allocation3 + $0x8] sm:$0xff] %vm2121_vm12, %v2028_v54  ;;  %2777 = vmatprep.mubr.msk.f32.mxu1 %vm2191_vm13, %v2170_v18  ;;  %v1482_v33 = vpop.permute.xlu1 %1481  ;;  %v2154_v35 = vld [vmem:[#allocation3] sm:$0xff] }
 0x195   : > { %1461 = vrot.lane.b32.xlu0 %v1967_v59, %s2997_s14  ;;  %1560 = vst.msk [vmem:[#allocation3 + $0x90] sm:$0xff] %vm1541_vm9, %v1482_v33  ;;  %2753 = vmatprep.mubr.msk.f32.mxu0 %vm2191_vm13, %v2154_v35  ;;  %v1795_v18 = vld [vmem:[#allocation2 + $0x171] sm:$0xff] }
 0x196   : > { %1302 = vrot.lane.b32.xlu1 %v1791_v11, %s2996_s13 }
 0x197   : > { %v1452_v23 = vpop.permute.xlu0 %1451 }
 0x198   : > { %1545 = vst.msk [vmem:[#allocation3 + $0x18] sm:$0xff] %vm1541_vm9, %v1452_v23  ;;  %v2060_v8 = vpop.permute.xlu1 %2059  ;;  %v1987_v23 = vld [vmem:[#allocation2 + $0x16a] sm:$0xff] }
 0x199   : > { %2039 = vrot.lane.b32.xlu0 %v1968_v32, %s3000_s8  ;;  %2139 = vst.msk [vmem:[#allocation3 + $0x88] sm:$0xff] %vm2121_vm12, %v2060_v8 }
 0x19a   : > { %1493 = vrot.lane.b32.xlu1 %v1983_v28, %s2997_s14 }
 0x19b   : > { %v1644_v13 = vpop.permute.xlu0 %1643  ;;  %v2155_v45 = vld [vmem:[#allocation3 + $0x8] sm:$0xff] }
 0x19c   : > { %1738 = vst.msk [vmem:[#allocation3 + $0x10] sm:$0xff] %vm1735_vm10, %v1644_v13  ;;  %2754 = vmatmul.mubr.msk.f32.vlgmr.msra.gmra.mrb[0].mxu0 %vm2191_vm13, %v2155_v45  ;;  %v1484_v49 = vpop.permute.xlu1 %1483 }
 0x19d   : > { %1463 = vrot.lane.b32.xlu0 %v1968_v32, %s2997_s14  ;;  %1561 = vst.msk [vmem:[#allocation3 + $0x98] sm:$0xff] %vm1541_vm9, %v1484_v49  ;;  %v1972_v49 = vld [vmem:[#allocation2 + $0xb2] sm:$0xff] }
 0x19e   : > { %2071 = vrot.lane.b32.xlu1 %v1984_v7, %s3000_s8 }
 0x19f   : > { %v1646_v16 = vpop.permute.xlu0 %1645 }
 0x1a0   : > { %1739 = vst.msk [vmem:[#allocation3 + $0x18] sm:$0xff] %vm1735_vm10, %v1646_v16  ;;  %v1676_v15 = vpop.permute.xlu1 %1675  ;;  %v2171_v41 = vld [vmem:[#allocation3 + $0x88] sm:$0xff] }
 0x1a1   : > { %1655 = vrot.lane.b32.xlu0 %v1583_v21, %s2998_s20  ;;  %1754 = vst.msk [vmem:[#allocation3 + $0x90] sm:$0xff] %vm1735_vm10, %v1676_v15  ;;  %2778 = vmatmul.mubr.msk.f32.vlgmr.msra.gmra.mrb[0].mxu1 %vm2191_vm13, %v2171_v41 }
 0x1a2   : > { %1495 = vrot.lane.b32.xlu1 %v1984_v7, %s2997_s14 }
 0x1a3   : > { %v1837_v26 = vpop.permute.xlu0 %1836 }
 0x1a4   : > { %1931 = vst.msk [vmem:[#allocation3 + $0x10] sm:$0xff] %vm1928_vm11, %v1837_v26  ;;  %v1678_v27 = vpop.permute.xlu1 %1677 }
 0x1a5   : > { %1657 = vrot.lane.b32.xlu0 %v1584_v42, %s2998_s20  ;;  %1755 = vst.msk [vmem:[#allocation3 + $0x98] sm:$0xff] %vm1735_vm10, %v1678_v27  ;;  %v1988_v42 = vld [vmem:[#allocation2 + $0x172] sm:$0xff]  ;;  %v1587_v27 = vld [vmem:[#allocation2 + $0xc0] sm:$0xff] }
 0x1a6   : > { %1687 = vrot.lane.b32.xlu1 %v3608_v55, %s2998_s20  ;;  %v1777_v55 = vld [vmem:[#allocation2 + $0x99] sm:$0xff] }
 0x1a7   : > { %v1261_v44 = vpop.permute.xlu0 %1260 }
 0x1a8   : > { %1353 = vst.msk [vmem:[#allocation3 + $0x20] sm:$0xff] %vm1348_vm8, %v1261_v44  ;;  %v1869_v40 = vpop.permute.xlu1 %1868 }
 0x1a9   : > { %1848 = vrot.lane.b32.xlu0 %v1776_v48, %s2999_s22  ;;  %1947 = vst.msk [vmem:[#allocation3 + $0x90] sm:$0xff] %vm1928_vm11, %v1869_v40 }
 0x1aa   : > { %1689 = vrot.lane.b32.xlu1 %v3610_v12, %s2998_s20  ;;  %v1969_v12 = vld [vmem:[#allocation2 + $0x92] sm:$0xff] }
 0x1ab   : > { %v1839_v56 = vpop.permute.xlu0 %1838 }
 0x1ac   : > { %1932 = vst.msk [vmem:[#allocation3 + $0x18] sm:$0xff] %vm1928_vm11, %v1839_v56  ;;  %v1293_v19 = vpop.permute.xlu1 %1292  ;;  %v1588_v56 = vld [vmem:[#allocation2 + $0xc8] sm:$0xff] }
 0x1ad   : > { %1272 = vrot.lane.b32.xlu0 %v1776_v48, %s2996_s13  ;;  %1369 = vst.msk [vmem:[#allocation3 + $0xa0] sm:$0xff] %vm1348_vm8, %v1293_v19  ;;  %v1603_v19 = vld [vmem:[#allocation2 + $0x180] sm:$0xff] }
 0x1ae   : > { %1880 = vrot.lane.b32.xlu1 %v1792_v30, %s2999_s22 }
 0x1af   : > { %v2030_v61 = vpop.permute.xlu0 %2029 }
 0x1b0   : > { %2124 = vst.msk [vmem:[#allocation3 + $0x10] sm:$0xff] %vm2121_vm12, %v2030_v61  ;;  %v1871_v60 = vpop.permute.xlu1 %1870  ;;  %v1780_v61 = vld [vmem:[#allocation2 + $0xc1] sm:$0xff] }
 0x1b1   : > { %1850 = vrot.lane.b32.xlu0 %v1777_v55, %s2999_s22  ;;  %1948 = vst.msk [vmem:[#allocation3 + $0x98] sm:$0xff] %vm1928_vm11, %v1871_v60 }
 0x1b2   : > { %1304 = vrot.lane.b32.xlu1 %v1792_v30, %s2996_s13 }
 0x1b3   : > { %v1263_v31 = vpop.permute.xlu0 %1262 }
 0x1b4   : > { %1354 = vst.msk [vmem:[#allocation3 + $0x28] sm:$0xff] %vm1348_vm8, %v1263_v31  ;;  %v2062_v52 = vpop.permute.xlu1 %2061 }
 0x1b5   : > { %2041 = vrot.lane.b32.xlu0 %v1969_v12, %s3000_s8  ;;  %2140 = vst.msk [vmem:[#allocation3 + $0x90] sm:$0xff] %vm2121_vm12, %v2062_v52  ;;  %v1796_v52 = vld [vmem:[#allocation2 + $0x181] sm:$0xff] }
 0x1b6   : > { %1882 = vrot.lane.b32.xlu1 %v1793_v9, %s2999_s22 }
 0x1b7   : > { %v1454_v43 = vpop.permute.xlu0 %1453  ;;  %v2156_v10 = vld [vmem:[#allocation3 + $0x10] sm:$0xff] }
 0x1b8   : > { %1546 = vst.msk [vmem:[#allocation3 + $0x20] sm:$0xff] %vm1541_vm9, %v1454_v43  ;;  %2756 = vmatprep.mubr.msk.f32.mxu0 %vm2191_vm13, %v2156_v10  ;;  %v1295_v57 = vpop.permute.xlu1 %1294  ;;  %v1781_v10 = vld [vmem:[#allocation2 + $0xc9] sm:$0xff] }
 0x1b9   : > { %1274 = vrot.lane.b32.xlu0 %v1777_v55, %s2996_s13  ;;  %1370 = vst.msk [vmem:[#allocation3 + $0xa8] sm:$0xff] %vm1348_vm8, %v1295_v57 }
 0x1ba   : > { %2073 = vrot.lane.b32.xlu1 %v1985_v34, %s3000_s8 }
 0x1bb   : > { %v2032_v51 = vpop.permute.xlu0 %2031 }
 0x1bc   : > { %2125 = vst.msk [vmem:[#allocation3 + $0x18] sm:$0xff] %vm2121_vm12, %v2032_v51  ;;  %v1486_v24 = vpop.permute.xlu1 %1485  ;;  %v2172_v38 = vld [vmem:[#allocation3 + $0x90] sm:$0xff] }
 0x1bd   : > { %1465 = vrot.lane.b32.xlu0 %v1969_v12, %s2997_s14  ;;  %1562 = vst.msk [vmem:[#allocation3 + $0xa0] sm:$0xff] %vm1541_vm9, %v1486_v24  ;;  %2780 = vmatprep.mubr.msk.f32.mxu1 %vm2191_vm13, %v2172_v38  ;;  %v1604_v12 = vld [vmem:[#allocation2 + $0x188] sm:$0xff] }
 0x1be   : > { %1306 = vrot.lane.b32.xlu1 %v1793_v9, %s2996_s13  ;;  %v1973_v51 = vld [vmem:[#allocation2 + $0xc2] sm:$0xff] }
 0x1bf   : > { %v1456_v3 = vpop.permute.xlu0 %1455  ;;  %v1797_v38 = vld [vmem:[#allocation2 + $0x189] sm:$0xff] }
 0x1c0   : > { %1547 = vst.msk [vmem:[#allocation3 + $0x28] sm:$0xff] %vm1541_vm9, %v1456_v3  ;;  %v2064_v1 = vpop.permute.xlu1 %2063 }
 0x1c1   : > { %2043 = vrot.lane.b32.xlu0 %v1970_v50, %s3000_s8  ;;  %2141 = vst.msk [vmem:[#allocation3 + $0x98] sm:$0xff] %vm2121_vm12, %v2064_v1 }
 0x1c2   : > { %1497 = vrot.lane.b32.xlu1 %v1985_v34, %s2997_s14 }
 0x1c3   : > { %v1648_v25 = vpop.permute.xlu0 %1647  ;;  %v2157_v39 = vld [vmem:[#allocation3 + $0x18] sm:$0xff] }
 0x1c4   : > { %1740 = vst.msk [vmem:[#allocation3 + $0x20] sm:$0xff] %vm1735_vm10, %v1648_v25  ;;  %2757 = vmatmul.mubr.msk.f32.gmra.mrb[2].mxu0 %vm2191_vm13, %v2157_v39  ;;  %v1488_v17 = vpop.permute.xlu1 %1487  ;;  %v1989_v25 = vld [vmem:[#allocation2 + $0x182] sm:$0xff] }
 0x1c5   : > { %1467 = vrot.lane.b32.xlu0 %v1970_v50, %s2997_s14  ;;  %1563 = vst.msk [vmem:[#allocation3 + $0xa8] sm:$0xff] %vm1541_vm9, %v1488_v17 }
 0x1c6   : > { %2075 = vrot.lane.b32.xlu1 %v1986_v20, %s3000_s8 }
 0x1c7   : > { %v1650_v29 = vpop.permute.xlu0 %1649 }
 0x1c8   : > { %1741 = vst.msk [vmem:[#allocation3 + $0x28] sm:$0xff] %vm1735_vm10, %v1650_v29  ;;  %v1680_v37 = vpop.permute.xlu1 %1679  ;;  %v2173_v4 = vld [vmem:[#allocation3 + $0x98] sm:$0xff] }
 0x1c9   : > { %1659 = vrot.lane.b32.xlu0 %v1585_v63, %s2998_s20  ;;  %1756 = vst.msk [vmem:[#allocation3 + $0xa0] sm:$0xff] %vm1735_vm10, %v1680_v37  ;;  %2781 = vmatmul.mubr.msk.f32.gmra.mrb[2].mxu1 %vm2191_vm13, %v2173_v4  ;;  %v1974_v29 = vld [vmem:[#allocation2 + $0xca] sm:$0xff] }
 0x1ca   : > { %1499 = vrot.lane.b32.xlu1 %v1986_v20, %s2997_s14 }
 0x1cb   : > { %v1841_v62 = vpop.permute.xlu0 %1840 }
 0x1cc   : > { %1933 = vst.msk [vmem:[#allocation3 + $0x20] sm:$0xff] %vm1928_vm11, %v1841_v62  ;;  %v1682_v46 = vpop.permute.xlu1 %1681 }
 0x1cd   : > { %1661 = vrot.lane.b32.xlu0 %v1586_v5, %s2998_s20  ;;  %1757 = vst.msk [vmem:[#allocation3 + $0xa8] sm:$0xff] %vm1735_vm10, %v1682_v46 }
 0x1ce   : > { %1691 = vrot.lane.b32.xlu1 %v1601_v2, %s2998_s20  ;;  %v1990_v2 = vld [vmem:[#allocation2 + $0x18a] sm:$0xff] }
 0x1cf   : > { %v1265_v36 = vpop.permute.xlu0 %1264 }
 0x1d0   : > { %1355 = vst.msk [vmem:[#allocation3 + $0x30] sm:$0xff] %vm1348_vm8, %v1265_v36  ;;  %v1873_v22 = vpop.permute.xlu1 %1872 }
 0x1d1   : > { %1852 = vrot.lane.b32.xlu0 %v1778_v14, %s2999_s22  ;;  %1949 = vst.msk [vmem:[#allocation3 + $0xa0] sm:$0xff] %vm1928_vm11, %v1873_v22 }
 0x1d2   : > { %1693 = vrot.lane.b32.xlu1 %v1602_v47, %s2998_s20 }
 0x1d3   : > { %v1843_v59 = vpop.permute.xlu0 %1842 }
 0x1d4   : > { %1934 = vst.msk [vmem:[#allocation3 + $0x28] sm:$0xff] %vm1928_vm11, %v1843_v59  ;;  %v1297_v11 = vpop.permute.xlu1 %1296  ;;  %v1590_v59 = vld [vmem:[#allocation2 + $0xe0] sm:$0xff] }
 0x1d5   : > { %1276 = vrot.lane.b32.xlu0 %v1778_v14, %s2996_s13  ;;  %1371 = vst.msk [vmem:[#allocation3 + $0xb0] sm:$0xff] %vm1348_vm8, %v1297_v11  ;;  %v1589_v14 = vld [vmem:[#allocation2 + $0xd8] sm:$0xff] }
 0x1d6   : > { %1884 = vrot.lane.b32.xlu1 %v1794_v6, %s2999_s22  ;;  %v1605_v11 = vld [vmem:[#allocation2 + $0x198] sm:$0xff] }
 0x1d7   : > { %v2034_v53 = vpop.permute.xlu0 %2033 }
 0x1d8   : > { %2126 = vst.msk [vmem:[#allocation3 + $0x20] sm:$0xff] %vm2121_vm12, %v2034_v53  ;;  %v1875_v28 = vpop.permute.xlu1 %1874  ;;  %v1782_v53 = vld [vmem:[#allocation2 + $0xd9] sm:$0xff] }
 0x1d9   : > { %1854 = vrot.lane.b32.xlu0 %v1779_v0, %s2999_s22  ;;  %1950 = vst.msk [vmem:[#allocation3 + $0xa8] sm:$0xff] %vm1928_vm11, %v1875_v28 }
 0x1da   : > { %1308 = vrot.lane.b32.xlu1 %v1794_v6, %s2996_s13 }
 0x1db   : > { %v1267_v54 = vpop.permute.xlu0 %1266 }
 0x1dc   : > { %1356 = vst.msk [vmem:[#allocation3 + $0x38] sm:$0xff] %vm1348_vm8, %v1267_v54  ;;  %v2066_v33 = vpop.permute.xlu1 %2065 }
 0x1dd   : > { %2045 = vrot.lane.b32.xlu0 %v1971_v58, %s3000_s8  ;;  %2142 = vst.msk [vmem:[#allocation3 + $0xa0] sm:$0xff] %vm2121_vm12, %v2066_v33 }
 0x1de   : > { %1886 = vrot.lane.b32.xlu1 %v1795_v18, %s2999_s22 }
 0x1df   : > { %v1458_v35 = vpop.permute.xlu0 %1457  ;;  %v2158_v32 = vld [vmem:[#allocation3 + $0x20] sm:$0xff] }
 0x1e0   : > { %1548 = vst.msk [vmem:[#allocation3 + $0x30] sm:$0xff] %vm1541_vm9, %v1458_v35  ;;  %2759 = vmatprep.mubr.msk.f32.mxu0 %vm2191_vm13, %v2158_v32  ;;  %v1299_v8 = vpop.permute.xlu1 %1298  ;;  %v1798_v35 = vld [vmem:[#allocation2 + $0x199] sm:$0xff] }
 0x1e1   : > { %1278 = vrot.lane.b32.xlu0 %v1779_v0, %s2996_s13  ;;  %1372 = vst.msk [vmem:[#allocation3 + $0xb8] sm:$0xff] %vm1348_vm8, %v1299_v8 }
 0x1e2   : > { %2077 = vrot.lane.b32.xlu1 %v1987_v23, %s3000_s8 }
 0x1e3   : > { %v2036_v13 = vpop.permute.xlu0 %2035 }
 0x1e4   : > { %2127 = vst.msk [vmem:[#allocation3 + $0x28] sm:$0xff] %vm2121_vm12, %v2036_v13  ;;  %v1490_v45 = vpop.permute.xlu1 %1489  ;;  %v2174_v7 = vld [vmem:[#allocation3 + $0xa0] sm:$0xff]  ;;  %v1799_v13 = vld [vmem:[#allocation2 + $0x1a1] sm:$0xff] }
 0x1e5   : > { %1469 = vrot.lane.b32.xlu0 %v1971_v58, %s2997_s14  ;;  %1564 = vst.msk [vmem:[#allocation3 + $0xb0] sm:$0xff] %vm1541_vm9, %v1490_v45  ;;  %2783 = vmatprep.mubr.msk.f32.mxu1 %vm2191_vm13, %v2174_v7  ;;  %v1606_v58 = vld [vmem:[#allocation2 + $0x1a0] sm:$0xff] }
 0x1e6   : > { %1310 = vrot.lane.b32.xlu1 %v1795_v18, %s2996_s13  ;;  %v1783_v18 = vld [vmem:[#allocation2 + $0xe1] sm:$0xff] }
 0x1e7   : > { %v1460_v21 = vpop.permute.xlu0 %1459  ;;  %v1976_v7 = vld [vmem:[#allocation2 + $0xe2] sm:$0xff] }
 0x1e8   : > { %1549 = vst.msk [vmem:[#allocation3 + $0x38] sm:$0xff] %vm1541_vm9, %v1460_v21  ;;  %v2068_v16 = vpop.permute.xlu1 %2067  ;;  %v1991_v21 = vld [vmem:[#allocation2 + $0x19a] sm:$0xff] }
 0x1e9   : > { %2047 = vrot.lane.b32.xlu0 %v1972_v49, %s3000_s8  ;;  %2143 = vst.msk [vmem:[#allocation3 + $0xa8] sm:$0xff] %vm2121_vm12, %v2068_v16 }
 0x1ea   : > { %1501 = vrot.lane.b32.xlu1 %v1987_v23, %s2997_s14  ;;  %v1975_v23 = vld [vmem:[#allocation2 + $0xda] sm:$0xff] }
 0x1eb   : > { %v1652_v15 = vpop.permute.xlu0 %1651  ;;  %v2159_v41 = vld [vmem:[#allocation3 + $0x28] sm:$0xff] }
 0x1ec   : > { %1742 = vst.msk [vmem:[#allocation3 + $0x30] sm:$0xff] %vm1735_vm10, %v1652_v15  ;;  %2760 = vmatmul.mubr.msk.f32.gmra.mrb[4].mxu0 %vm2191_vm13, %v2159_v41  ;;  %v1492_v26 = vpop.permute.xlu1 %1491 }
 0x1ed   : > { %1471 = vrot.lane.b32.xlu0 %v1972_v49, %s2997_s14  ;;  %1565 = vst.msk [vmem:[#allocation3 + $0xb8] sm:$0xff] %vm1541_vm9, %v1492_v26 }
 0x1ee   : > { %2079 = vrot.lane.b32.xlu1 %v1988_v42, %s3000_s8 }
 0x1ef   : > { %v1654_v48 = vpop.permute.xlu0 %1653 }
 0x1f0   : > { %1743 = vst.msk [vmem:[#allocation3 + $0x38] sm:$0xff] %vm1735_vm10, %v1654_v48  ;;  %v1684_v44 = vpop.permute.xlu1 %1683  ;;  %v2175_v40 = vld [vmem:[#allocation3 + $0xa8] sm:$0xff] }
 0x1f1   : > { %1663 = vrot.lane.b32.xlu0 %v1587_v27, %s2998_s20  ;;  %1758 = vst.msk [vmem:[#allocation3 + $0xb0] sm:$0xff] %vm1735_vm10, %v1684_v44  ;;  %2784 = vmatmul.mubr.msk.f32.gmra.mrb[4].mxu1 %vm2191_vm13, %v2175_v40 }
 0x1f2   : > { %1503 = vrot.lane.b32.xlu1 %v1988_v42, %s2997_s14  ;;  %v1992_v42 = vld [vmem:[#allocation2 + $0x1a2] sm:$0xff] }
 0x1f3   : > { %v1845_v30 = vpop.permute.xlu0 %1844 }
 0x1f4   : > { %1935 = vst.msk [vmem:[#allocation3 + $0x30] sm:$0xff] %vm1928_vm11, %v1845_v30  ;;  %v1686_v55 = vpop.permute.xlu1 %1685 }
 0x1f5   : > { %1665 = vrot.lane.b32.xlu0 %v1588_v56, %s2998_s20  ;;  %1759 = vst.msk [vmem:[#allocation3 + $0xb8] sm:$0xff] %vm1735_vm10, %v1686_v55 }
 0x1f6   : > { %1695 = vrot.lane.b32.xlu1 %v1603_v19, %s2998_s20 }
 0x1f7   : > { %v1269_v60 = vpop.permute.xlu0 %1268 }
 0x1f8   : > { %1357 = vst.msk [vmem:[#allocation3 + $0x40] sm:$0xff] %vm1348_vm8, %v1269_v60  ;;  %v1877_v31 = vpop.permute.xlu1 %1876 }
 0x1f9   : > { %1856 = vrot.lane.b32.xlu0 %v1780_v61, %s2999_s22  ;;  %1951 = vst.msk [vmem:[#allocation3 + $0xb0] sm:$0xff] %vm1928_vm11, %v1877_v31 }
 0x1fa   : > { %1697 = vrot.lane.b32.xlu1 %v1604_v12, %s2998_s20 }
 0x1fb   : > { %v1847_v9 = vpop.permute.xlu0 %1846 }
 0x1fc   : > { %1936 = vst.msk [vmem:[#allocation3 + $0x38] sm:$0xff] %vm1928_vm11, %v1847_v9  ;;  %v1301_v43 = vpop.permute.xlu1 %1300 }
 0x1fd   : > { %1280 = vrot.lane.b32.xlu0 %v1780_v61, %s2996_s13  ;;  %1373 = vst.msk [vmem:[#allocation3 + $0xc0] sm:$0xff] %vm1348_vm8, %v1301_v43 }
 0x1fe   : > { %1888 = vrot.lane.b32.xlu1 %v1796_v52, %s2999_s22 }
 0x1ff   : > { %v2038_v34 = vpop.permute.xlu0 %2037 }
 0x200   : > { %2128 = vst.msk [vmem:[#allocation3 + $0x30] sm:$0xff] %vm2121_vm12, %v2038_v34  ;;  %v1879_v57 = vpop.permute.xlu1 %1878 }
 0x201   : > { %1858 = vrot.lane.b32.xlu0 %v1781_v10, %s2999_s22  ;;  %1952 = vst.msk [vmem:[#allocation3 + $0xb8] sm:$0xff] %vm1928_vm11, %v1879_v57 }
 0x202   : > { %1312 = vrot.lane.b32.xlu1 %v1796_v52, %s2996_s13 }
 0x203   : > { %v1271_v24 = vpop.permute.xlu0 %1270 }
 0x204   : > { %1358 = vst.msk [vmem:[#allocation3 + $0x48] sm:$0xff] %vm1348_vm8, %v1271_v24  ;;  %v2070_v50 = vpop.permute.xlu1 %2069 }
 0x205   : > { %2049 = vrot.lane.b32.xlu0 %v1973_v51, %s3000_s8  ;;  %2144 = vst.msk [vmem:[#allocation3 + $0xb0] sm:$0xff] %vm2121_vm12, %v2070_v50 }
 0x206   : > { %1890 = vrot.lane.b32.xlu1 %v1797_v38, %s2999_s22 }
 0x207   : > { %v1462_v3 = vpop.permute.xlu0 %1461  ;;  %v2160_v1 = vld [vmem:[#allocation3 + $0x30] sm:$0xff] }
 0x208   : > { %1550 = vst.msk [vmem:[#allocation3 + $0x40] sm:$0xff] %vm1541_vm9, %v1462_v3  ;;  %2762 = vmatprep.mubr.msk.f32.mxu0 %vm2191_vm13, %v2160_v1  ;;  %v1303_v39 = vpop.permute.xlu1 %1302 }
 0x209   : > { %1282 = vrot.lane.b32.xlu0 %v1781_v10, %s2996_s13  ;;  %1374 = vst.msk [vmem:[#allocation3 + $0xc8] sm:$0xff] %vm1348_vm8, %v1303_v39 }
 0x20a   : > { %2081 = vrot.lane.b32.xlu1 %v1989_v25, %s3000_s8 }
 0x20b   : > { %v2040_v20 = vpop.permute.xlu0 %2039 }
 0x20c   : > { %2129 = vst.msk [vmem:[#allocation3 + $0x38] sm:$0xff] %vm2121_vm12, %v2040_v20  ;;  %v1494_v17 = vpop.permute.xlu1 %1493  ;;  %v2176_v63 = vld [vmem:[#allocation3 + $0xb0] sm:$0xff] }
 0x20d   : > { %1473 = vrot.lane.b32.xlu0 %v1973_v51, %s2997_s14  ;;  %1566 = vst.msk [vmem:[#allocation3 + $0xc0] sm:$0xff] %vm1541_vm9, %v1494_v17  ;;  %2786 = vmatprep.mubr.msk.f32.mxu1 %vm2191_vm13, %v2176_v63 }
 0x20e   : > { %1314 = vrot.lane.b32.xlu1 %v1797_v38, %s2996_s13  ;;  %s2629_s13 = sshll.u32 %s188_s12, 8 }
 0x20f   : > { %v1464_v37 = vpop.permute.xlu0 %1463 }
 0x210   : > { %1551 = vst.msk [vmem:[#allocation3 + $0x48] sm:$0xff] %vm1541_vm9, %v1464_v37  ;;  %v2072_v4 = vpop.permute.xlu1 %2071 }
 0x211   : > { %2051 = vrot.lane.b32.xlu0 %v1974_v29, %s3000_s8  ;;  %2145 = vst.msk [vmem:[#allocation3 + $0xb8] sm:$0xff] %vm2121_vm12, %v2072_v4 }
 0x212   : > { %1505 = vrot.lane.b32.xlu1 %v1989_v25, %s2997_s14 }
 0x213   : > { %v1656_v5 = vpop.permute.xlu0 %1655  ;;  %v2161_v62 = vld [vmem:[#allocation3 + $0x38] sm:$0xff] }
 0x214   : > { %1744 = vst.msk [vmem:[#allocation3 + $0x40] sm:$0xff] %vm1735_vm10, %v1656_v5  ;;  %2763 = vmatmul.mubr.msk.f32.gmra.mrb[6].mxu0 %vm2191_vm13, %v2161_v62  ;;  %v1496_v46 = vpop.permute.xlu1 %1495 }
 0x215   : > { %1475 = vrot.lane.b32.xlu0 %v1974_v29, %s2997_s14  ;;  %1567 = vst.msk [vmem:[#allocation3 + $0xc8] sm:$0xff] %vm1541_vm9, %v1496_v46 }
 0x216   : > { %2083 = vrot.lane.b32.xlu1 %v1990_v2, %s3000_s8 }
 0x217   : > { %v1658_v36 = vpop.permute.xlu0 %1657 }
 0x218   : > { %1745 = vst.msk [vmem:[#allocation3 + $0x48] sm:$0xff] %vm1735_vm10, %v1658_v36  ;;  %v1688_v47 = vpop.permute.xlu1 %1687  ;;  %v2177_v22 = vld [vmem:[#allocation3 + $0xb8] sm:$0xff] }
 0x219   : > { %1667 = vrot.lane.b32.xlu0 %v1589_v14, %s2998_s20  ;;  %1760 = vst.msk [vmem:[#allocation3 + $0xc0] sm:$0xff] %vm1735_vm10, %v1688_v47  ;;  %2787 = vmatmul.mubr.msk.f32.gmra.mrb[6].mxu1 %vm2191_vm13, %v2177_v22 }
 0x21a   : > { %1507 = vrot.lane.b32.xlu1 %v1990_v2, %s2997_s14  ;;  %s4250_s14 = scalar_lea.vmem [#allocation4], %s2629_s13 }
 0x21b   : > { %v1849_v6 = vpop.permute.xlu0 %1848 }
 0x21c   : > { %1937 = vst.msk [vmem:[#allocation3 + $0x40] sm:$0xff] %vm1928_vm11, %v1849_v6  ;;  %v1690_v0 = vpop.permute.xlu1 %1689 }
 0x21d   : > { %1669 = vrot.lane.b32.xlu0 %v1590_v59, %s2998_s20  ;;  %1761 = vst.msk [vmem:[#allocation3 + $0xc8] sm:$0xff] %vm1735_vm10, %v1690_v0 }
 0x21e   : > { %1699 = vrot.lane.b32.xlu1 %v1605_v11, %s2998_s20 }
 0x21f   : > { %v1273_v28 = vpop.permute.xlu0 %1272 }
 0x220   : > { %1359 = vst.msk [vmem:[#allocation3 + $0x50] sm:$0xff] %vm1348_vm8, %v1273_v28  ;;  %v1881_v54 = vpop.permute.xlu1 %1880 }
 0x221   : > { %1860 = vrot.lane.b32.xlu0 %v1782_v53, %s2999_s22  ;;  %1953 = vst.msk [vmem:[#allocation3 + $0xc0] sm:$0xff] %vm1928_vm11, %v1881_v54 }
 0x222   : > { %1701 = vrot.lane.b32.xlu1 %v1606_v58, %s2998_s20  ;;  %s2705_s20 = sshll.u32 %s3049_s19, 12  ;;  %s3001_s19 = smov [#allocation4]  }
 0x223   : > { %v1851_v33 = vpop.permute.xlu0 %1850  ;;  %s4321_s28 = scalar_lea.hbm %s4375_s4, %s2705_s20  ;;  %s2932_s5 = sshll.u32 %s3001_s19, 4  ;;  %s2933_s5 = int_to_ptr.vmem [resolvable:$false] %s2932_s5 }
 0x224   : > { %1938 = vst.msk [vmem:[#allocation3 + $0x48] sm:$0xff] %vm1928_vm11, %v1851_v33  ;;  %v1305_v32 = vpop.permute.xlu1 %1304  ;;  %s2934_s6 = scalar_lea.vmem %s2933_s5, 8192 }
 0x225   : > { %1862 = vrot.lane.b32.xlu0 %v1783_v18, %s2999_s22  ;;  %1375 = vst.msk [vmem:[#allocation3 + $0xd0] sm:$0xff] %vm1348_vm8, %v1305_v32 }
 0x226   : > { %1892 = vrot.lane.b32.xlu1 %v1798_v35, %s2999_s22 }
 0x227   : > { %v2042_v8 = vpop.permute.xlu0 %2041 }
 0x228   : > { %2130 = vst.msk [vmem:[#allocation3 + $0x40] sm:$0xff] %vm2121_vm12, %v2042_v8  ;;  %v1883_v45 = vpop.permute.xlu1 %1882 }
 0x229   : > { %2053 = vrot.lane.b32.xlu0 %v1975_v23, %s3000_s8  ;;  %1954 = vst.msk [vmem:[#allocation3 + $0xc8] sm:$0xff] %vm1928_vm11, %v1883_v45 }
 0x22a   : > { %1894 = vrot.lane.b32.xlu1 %v1799_v13, %s2999_s22  ;;  %s2563_s22 = sshll.u32 %s4250_s14, 4  ;;  %s4323_s22 = int_to_ptr.vmem [resolvable:$true] %s2563_s22 }
 0x22b   : > { %v1275_v49 = vpop.permute.xlu0 %1274  ;;  %s2928_s30 = scalar_lea.vmem %s4323_s22, 4096  ;;  %p2935_p0 = scmp.lt.s32.totalorder %s4323_s22, %s2933_s5 }
 0x22c   : > { %1360 = vst.msk [vmem:[#allocation3 + $0x58] sm:$0xff] %vm1348_vm8, %v1275_v49  ;;  %v2074_v16 = vpop.permute.xlu1 %2073  ;;  %p2929_p11 = scmp.ne.s32.totalorder %s4323_s22, %s2928_s30  ;;  %p2936_p1 = scmp.lt.s32.totalorder %s2934_s6, %s2928_s30 }
 0x22d   : > { %2055 = vrot.lane.b32.xlu0 %v1976_v7, %s3000_s8  ;;  %2146 = vst.msk [vmem:[#allocation3 + $0xc0] sm:$0xff] %vm2121_vm12, %v2074_v16 }
 0x22e   : > { %2085 = vrot.lane.b32.xlu1 %v1991_v21, %s3000_s8  ;;  %p2930_p12 = pnand %p2929_p11, %p3066_p5  ;;  %p2937_p2 = por %p2936_p1, %p2935_p0 }
 0x22f   : > { %v1466_v15 = vpop.permute.xlu0 %1465  ;;  %v2162_v41 = vld [vmem:[#allocation3 + $0x40] sm:$0xff] }
 0x230   : > { %1552 = vst.msk [vmem:[#allocation3 + $0x50] sm:$0xff] %vm1541_vm9, %v1466_v15  ;;  %2765 = vmatprep.mubr.msk.f32.mxu0 %vm2191_vm13, %v2162_v41  ;;  %v1307_v26 = vpop.permute.xlu1 %1306  ;;  %p2931_p13 = pneg %p2930_p12 }
 0x231   : > { %1376 = vst.msk [vmem:[#allocation3 + $0xd8] sm:$0xff] %vm1348_vm8, %v1307_v26 }
 0x232   : > { %2087 = vrot.lane.b32.xlu1 %v1992_v42, %s3000_s8  ;;  %p2938_p3 = pnand %p2937_p2, %p2931_p13 }
 0x233   : > { %v2044_v27 = vpop.permute.xlu0 %2043 }
 0x234   : > { %2131 = vst.msk [vmem:[#allocation3 + $0x48] sm:$0xff] %vm2121_vm12, %v2044_v27  ;;  %v1498_v48 = vpop.permute.xlu1 %1497  ;;  %v2178_v44 = vld [vmem:[#allocation3 + $0xc0] sm:$0xff] }
 0x235   : > { %1568 = vst.msk [vmem:[#allocation3 + $0xd0] sm:$0xff] %vm1541_vm9, %v1498_v48  ;;  %2789 = vmatprep.mubr.msk.f32.mxu1 %vm2191_vm13, %v2178_v44 }
 0x237   : > { %v1468_v40 = vpop.permute.xlu0 %1467 }
 0x238   : > { %1553 = vst.msk [vmem:[#allocation3 + $0x58] sm:$0xff] %vm1541_vm9, %v1468_v40  ;;  %v2076_v56 = vpop.permute.xlu1 %2075 }
 0x239   : > { %2147 = vst.msk [vmem:[#allocation3 + $0xc8] sm:$0xff] %vm2121_vm12, %v2076_v56 }
 0x23b   : > { %v1660_v30 = vpop.permute.xlu0 %1659  ;;  %v2163_v19 = vld [vmem:[#allocation3 + $0x48] sm:$0xff] }
 0x23c   : > { %1746 = vst.msk [vmem:[#allocation3 + $0x50] sm:$0xff] %vm1735_vm10, %v1660_v30  ;;  %2766 = vmatmul.mubr.msk.f32.gmra.mrb[8].mxu0 %vm2191_vm13, %v2163_v19  ;;  %v1500_v55 = vpop.permute.xlu1 %1499 }
 0x23d   : > { %1569 = vst.msk [vmem:[#allocation3 + $0xd8] sm:$0xff] %vm1541_vm9, %v1500_v55 }
 0x23f   : > { %v1662_v61 = vpop.permute.xlu0 %1661 }
 0x240   : > { %1747 = vst.msk [vmem:[#allocation3 + $0x58] sm:$0xff] %vm1735_vm10, %v1662_v61  ;;  %v1692_v60 = vpop.permute.xlu1 %1691  ;;  %v2179_v12 = vld [vmem:[#allocation3 + $0xc8] sm:$0xff] }
 0x241   : > { %1762 = vst.msk [vmem:[#allocation3 + $0xd0] sm:$0xff] %vm1735_vm10, %v1692_v60  ;;  %2790 = vmatmul.mubr.msk.f32.gmra.mrb[8].mxu1 %vm2191_vm13, %v2179_v12 }
 0x243   : > { %v1853_v31 = vpop.permute.xlu0 %1852 }
 0x244   : > { %1939 = vst.msk [vmem:[#allocation3 + $0x50] sm:$0xff] %vm1928_vm11, %v1853_v31  ;;  %v1694_v9 = vpop.permute.xlu1 %1693 }
 0x245   : > { %1763 = vst.msk [vmem:[#allocation3 + $0xd8] sm:$0xff] %vm1735_vm10, %v1694_v9 }
 0x247   : > { %v1277_v52 = vpop.permute.xlu0 %1276 }
 0x248   : > { %1361 = vst.msk [vmem:[#allocation3 + $0x60] sm:$0xff] %vm1348_vm8, %v1277_v52  ;;  %v1885_v43 = vpop.permute.xlu1 %1884 }
 0x249   : > { %1955 = vst.msk [vmem:[#allocation3 + $0xd0] sm:$0xff] %vm1928_vm11, %v1885_v43 }
 0x24b   : > { %v1855_v10 = vpop.permute.xlu0 %1854 }
 0x24c   : > { %1940 = vst.msk [vmem:[#allocation3 + $0x58] sm:$0xff] %vm1928_vm11, %v1855_v10  ;;  %v1309_v34 = vpop.permute.xlu1 %1308 }
 0x24d   : > { %1377 = vst.msk [vmem:[#allocation3 + $0xe0] sm:$0xff] %vm1348_vm8, %v1309_v34 }
 0x24f   : > { %v2046_v57 = vpop.permute.xlu0 %2045 }
 0x250   : > { %2132 = vst.msk [vmem:[#allocation3 + $0x50] sm:$0xff] %vm2121_vm12, %v2046_v57  ;;  %v1887_v51 = vpop.permute.xlu1 %1886 }
 0x251   : > { %1956 = vst.msk [vmem:[#allocation3 + $0xd8] sm:$0xff] %vm1928_vm11, %v1887_v51 }
 0x253   : > { %v1279_v24 = vpop.permute.xlu0 %1278 }
 0x254   : > { %1362 = vst.msk [vmem:[#allocation3 + $0x68] sm:$0xff] %vm1348_vm8, %v1279_v24  ;;  %v2078_v38 = vpop.permute.xlu1 %2077 }
 0x255   : > { %2148 = vst.msk [vmem:[#allocation3 + $0xd0] sm:$0xff] %vm2121_vm12, %v2078_v38 }
 0x257   : > { %v1470_v50 = vpop.permute.xlu0 %1469  ;;  %v2164_v3 = vld [vmem:[#allocation3 + $0x50] sm:$0xff] }
 0x258   : > { %1554 = vst.msk [vmem:[#allocation3 + $0x60] sm:$0xff] %vm1541_vm9, %v1470_v50  ;;  %2768 = vmatprep.mubr.msk.f32.mxu0 %vm2191_vm13, %v2164_v3  ;;  %v1311_v1 = vpop.permute.xlu1 %1310 }
 0x259   : > { %1378 = vst.msk [vmem:[#allocation3 + $0xe8] sm:$0xff] %vm1348_vm8, %v1311_v1 }
 0x25b   : > { %v2048_v25 = vpop.permute.xlu0 %2047 }
 0x25c   : > { %2133 = vst.msk [vmem:[#allocation3 + $0x58] sm:$0xff] %vm2121_vm12, %v2048_v25  ;;  %v1502_v39 = vpop.permute.xlu1 %1501  ;;  %v2180_v20 = vld [vmem:[#allocation3 + $0xd0] sm:$0xff] }
 0x25d   : > { %1570 = vst.msk [vmem:[#allocation3 + $0xe0] sm:$0xff] %vm1541_vm9, %v1502_v39  ;;  %2792 = vmatprep.mubr.msk.f32.mxu1 %vm2191_vm13, %v2180_v20 }
 0x25f   : > { %v1472_v17 = vpop.permute.xlu0 %1471 }
 0x260   : > { %1555 = vst.msk [vmem:[#allocation3 + $0x68] sm:$0xff] %vm1541_vm9, %v1472_v17  ;;  %v2080_v63 = vpop.permute.xlu1 %2079 }
 0x261   : > { %2149 = vst.msk [vmem:[#allocation3 + $0xd8] sm:$0xff] %vm2121_vm12, %v2080_v63 }
 0x263   : > { %v1664_v29 = vpop.permute.xlu0 %1663  ;;  %v2165_v37 = vld [vmem:[#allocation3 + $0x58] sm:$0xff] }
 0x264   : > { %1748 = vst.msk [vmem:[#allocation3 + $0x60] sm:$0xff] %vm1735_vm10, %v1664_v29  ;;  %2769 = vmatmul.mubr.msk.f32.gmra.mrb[10].mxu0 %vm2191_vm13, %v2165_v37  ;;  %v1504_v4 = vpop.permute.xlu1 %1503 }
 0x265   : > { %1571 = vst.msk [vmem:[#allocation3 + $0xe8] sm:$0xff] %vm1541_vm9, %v1504_v4 }
 0x267   : > { %v1666_v5 = vpop.permute.xlu0 %1665 }
 0x268   : > { %1749 = vst.msk [vmem:[#allocation3 + $0x68] sm:$0xff] %vm1735_vm10, %v1666_v5  ;;  %v1696_v62 = vpop.permute.xlu1 %1695  ;;  %v2181_v2 = vld [vmem:[#allocation3 + $0xd8] sm:$0xff] }
 0x269   : > { %1764 = vst.msk [vmem:[#allocation3 + $0xe0] sm:$0xff] %vm1735_vm10, %v1696_v62  ;;  %2793 = vmatmul.mubr.msk.f32.gmra.mrb[10].mxu1 %vm2191_vm13, %v2181_v2 }
 0x26b   : > { %v1857_v46 = vpop.permute.xlu0 %1856 }
 0x26c   : > { %1941 = vst.msk [vmem:[#allocation3 + $0x60] sm:$0xff] %vm1928_vm11, %v1857_v46  ;;  %v1698_v14 = vpop.permute.xlu1 %1697 }
 0x26d   : > { %1765 = vst.msk [vmem:[#allocation3 + $0xe8] sm:$0xff] %vm1735_vm10, %v1698_v14 }
 0x26f   : > { %v1281_v36 = vpop.permute.xlu0 %1280  ;;  %v2755_v47 = vpop.f32.mrb[0].mxu0 }
 0x270   : > { %1363 = vst.msk [vmem:[#allocation3 + $0x70] sm:$0xff] %vm1348_vm8, %v1281_v36  ;;  %2518 = vst [vmem:[%s4250_s14 + $0x8] sm:$0xff] %v2755_v47  ;;  %v2358_v22 = vpop.f32.mrb[1].mxu0  ;;  %v1889_v59 = vpop.permute.xlu1 %1888 }
 0x271   : > { %2517 = vst [vmem:[%s4250_s14] sm:$0xff] %v2358_v22  ;;  %1957 = vst.msk [vmem:[#allocation3 + $0xe0] sm:$0xff] %vm1928_vm11, %v1889_v59 }
 0x273   : > { %v1859_v6 = vpop.permute.xlu0 %1858 }
 0x274   : > { %1942 = vst.msk [vmem:[#allocation3 + $0x68] sm:$0xff] %vm1928_vm11, %v1859_v6  ;;  %v2779_v11 = vpop.f32.mrb[0].mxu1  ;;  %v1313_v0 = vpop.permute.xlu1 %1312 }
 0x275   : > { %2534 = vst [vmem:[%s4250_s14 + $0x88] sm:$0xff] %v2779_v11  ;;  %1379 = vst.msk [vmem:[#allocation3 + $0xf0] sm:$0xff] %vm1348_vm8, %v1313_v0  ;;  %v2438_v53 = vpop.f32.mrb[1].mxu1 }
 0x276   : > { %2533 = vst [vmem:[%s4250_s14 + $0x80] sm:$0xff] %v2438_v53 }
 0x277   : > { %v2050_v28 = vpop.permute.xlu0 %2049 }
 0x278   : > { %2134 = vst.msk [vmem:[#allocation3 + $0x60] sm:$0xff] %vm2121_vm12, %v2050_v28  ;;  %v1891_v58 = vpop.permute.xlu1 %1890 }
 0x279   : > { %1958 = vst.msk [vmem:[#allocation3 + $0xe8] sm:$0xff] %vm1928_vm11, %v1891_v58 }
 0x27b   : > { %v1283_v54 = vpop.permute.xlu0 %1282 }
 0x27c   : > { %1364 = vst.msk [vmem:[#allocation3 + $0x78] sm:$0xff] %vm1348_vm8, %v1283_v54  ;;  %v2082_v18 = vpop.permute.xlu1 %2081 }
 0x27d   : > { %2150 = vst.msk [vmem:[#allocation3 + $0xe0] sm:$0xff] %vm2121_vm12, %v2082_v18 }
 0x27f   : > { %v1474_v33 = vpop.permute.xlu0 %1473  ;;  %v2166_v35 = vld [vmem:[#allocation3 + $0x60] sm:$0xff] }
 0x280   : > { %1556 = vst.msk [vmem:[#allocation3 + $0x70] sm:$0xff] %vm1541_vm9, %v1474_v33  ;;  %2771 = vmatprep.mubr.msk.f32.mxu0 %vm2191_vm13, %v2166_v35  ;;  %v1315_v32 = vpop.permute.xlu1 %1314 }
 0x281   : > { %1380 = vst.msk [vmem:[#allocation3 + $0xf8] sm:$0xff] %vm1348_vm8, %v1315_v32 }
 0x283   : > { %v2052_v23 = vpop.permute.xlu0 %2051 }
 0x284   : > { %2135 = vst.msk [vmem:[#allocation3 + $0x68] sm:$0xff] %vm2121_vm12, %v2052_v23  ;;  %v1506_v8 = vpop.permute.xlu1 %1505  ;;  %v2182_v13 = vld [vmem:[#allocation3 + $0xe0] sm:$0xff] }
 0x285   : > { %1572 = vst.msk [vmem:[#allocation3 + $0xf0] sm:$0xff] %vm1541_vm9, %v1506_v8  ;;  %2795 = vmatprep.mubr.msk.f32.mxu1 %vm2191_vm13, %v2182_v13 }
 0x287   : > { %v1476_v45 = vpop.permute.xlu0 %1475 }
 0x288   : > { %1557 = vst.msk [vmem:[#allocation3 + $0x78] sm:$0xff] %vm1541_vm9, %v1476_v45  ;;  %v2084_v7 = vpop.permute.xlu1 %2083 }
 0x289   : > { %2151 = vst.msk [vmem:[#allocation3 + $0xe8] sm:$0xff] %vm2121_vm12, %v2084_v7 }
 0x28b   : > { %v1668_v49 = vpop.permute.xlu0 %1667  ;;  %v2167_v21 = vld [vmem:[#allocation3 + $0x68] sm:$0xff] }
 0x28c   : > { %1750 = vst.msk [vmem:[#allocation3 + $0x70] sm:$0xff] %vm1735_vm10, %v1668_v49  ;;  %2772 = vmatmul.mubr.msk.f32.gmra.mrb[12].mxu0 %vm2191_vm13, %v2167_v21  ;;  %v1508_v16 = vpop.permute.xlu1 %1507 }
 0x28d   : > { %1573 = vst.msk [vmem:[#allocation3 + $0xf8] sm:$0xff] %vm1541_vm9, %v1508_v16 }
 0x28f   : > { %v1670_v15 = vpop.permute.xlu0 %1669 }
 0x290   : > { %1751 = vst.msk [vmem:[#allocation3 + $0x78] sm:$0xff] %vm1735_vm10, %v1670_v15  ;;  %v1700_v41 = vpop.permute.xlu1 %1699  ;;  %v2183_v42 = vld [vmem:[#allocation3 + $0xe8] sm:$0xff] }
 0x291   : > { %1766 = vst.msk [vmem:[#allocation3 + $0xf0] sm:$0xff] %vm1735_vm10, %v1700_v41  ;;  %2796 = vmatmul.mubr.msk.f32.gmra.mrb[12].mxu1 %vm2191_vm13, %v2183_v42 }
 0x293   : > { %v1861_v26 = vpop.permute.xlu0 %1860 }
 0x294   : > { %1943 = vst.msk [vmem:[#allocation3 + $0x70] sm:$0xff] %vm1928_vm11, %v1861_v26  ;;  %v1702_v27 = vpop.permute.xlu1 %1701 }
 0x295   : > { %1767 = vst.msk [vmem:[#allocation3 + $0xf8] sm:$0xff] %vm1735_vm10, %v1702_v27 }
 0x297   : > { %v1863_v48 = vpop.permute.xlu0 %1862  ;;  %v2758_v44 = vpop.f32.mrb[2].mxu0 }
 0x298   : > { %1944 = vst.msk [vmem:[#allocation3 + $0x78] sm:$0xff] %vm1928_vm11, %v1863_v48  ;;  %2520 = vst [vmem:[%s4250_s14 + $0x18] sm:$0xff] %v2758_v44  ;;  %v2368_v40 = vpop.f32.mrb[3].mxu0  ;;  %v1893_v56 = vpop.permute.xlu1 %1892 }
 0x299   : > { %2519 = vst [vmem:[%s4250_s14 + $0x10] sm:$0xff] %v2368_v40  ;;  %1959 = vst.msk [vmem:[#allocation3 + $0xf0] sm:$0xff] %vm1928_vm11, %v1893_v56 }
 0x29b   : > { %v2054_v30 = vpop.permute.xlu0 %2053 }
 0x29c   : > { %2136 = vst.msk [vmem:[#allocation3 + $0x70] sm:$0xff] %vm2121_vm12, %v2054_v30  ;;  %v2782_v19 = vpop.f32.mrb[2].mxu1  ;;  %v1895_v55 = vpop.permute.xlu1 %1894 }
 0x29d   : > { %2536 = vst [vmem:[%s4250_s14 + $0x98] sm:$0xff] %v2782_v19  ;;  %1960 = vst.msk [vmem:[#allocation3 + $0xf8] sm:$0xff] %vm1928_vm11, %v1895_v55  ;;  %v2448_v61 = vpop.f32.mrb[3].mxu1 }
 0x29e   : > { %2535 = vst [vmem:[%s4250_s14 + $0x90] sm:$0xff] %v2448_v61 }
 0x29f   : > { %v2056_v60 = vpop.permute.xlu0 %2055 }
 0x2a0   : > { %2137 = vst.msk [vmem:[#allocation3 + $0x78] sm:$0xff] %vm2121_vm12, %v2056_v60  ;;  %v2086_v12 = vpop.permute.xlu1 %2085 }
 0x2a1   : > { %2152 = vst.msk [vmem:[#allocation3 + $0xf0] sm:$0xff] %vm2121_vm12, %v2086_v12 }
 0x2a3   : > { %v2168_v31 = vld [vmem:[#allocation3 + $0x70] sm:$0xff] }
 0x2a4   : > { %2774 = vmatprep.mubr.msk.f32.mxu0 %vm2191_vm13, %v2168_v31  ;;  %v2088_v9 = vpop.permute.xlu1 %2087 }
 0x2a5   : > { %2153 = vst.msk [vmem:[#allocation3 + $0xf8] sm:$0xff] %vm2121_vm12, %v2088_v9 }
 0x2a7   : > { %v2169_v52 = vld [vmem:[#allocation3 + $0x78] sm:$0xff] }
 0x2a8   : > { %2775 = vmatmul.mubr.msk.f32.gmra.mrb[14].mxu0 %vm2191_vm13, %v2169_v52  ;;  %v2184_v43 = vld [vmem:[#allocation3 + $0xf0] sm:$0xff] }
 0x2a9   : > { %2798 = vmatprep.mubr.msk.f32.mxu1 %vm2191_vm13, %v2184_v43 }
 0x2ac   : > { %v2185_v10 = vld [vmem:[#allocation3 + $0xf8] sm:$0xff] }
 0x2ad   : > { %2799 = vmatmul.mubr.msk.f32.gmra.mrb[14].mxu1 %vm2191_vm13, %v2185_v10 }
 0x2bf   : > { %v2761_v34 = vpop.f32.mrb[4].mxu0 }
 0x2c0   : > { %2522 = vst [vmem:[%s4250_s14 + $0x28] sm:$0xff] %v2761_v34  ;;  %v2378_v57 = vpop.f32.mrb[5].mxu0 }
 0x2c1   : > { %2521 = vst [vmem:[%s4250_s14 + $0x20] sm:$0xff] %v2378_v57 }
 0x2c4   : > { %v2785_v51 = vpop.f32.mrb[4].mxu1 }
 0x2c5   : > { %2538 = vst [vmem:[%s4250_s14 + $0xa8] sm:$0xff] %v2785_v51  ;;  %v2458_v24 = vpop.f32.mrb[5].mxu1 }
 0x2c6   : > { %2537 = vst [vmem:[%s4250_s14 + $0xa0] sm:$0xff] %v2458_v24 }
 0x2e7   : > { %v2764_v38 = vpop.f32.mrb[6].mxu0 }
 0x2e8   : > { %2524 = vst [vmem:[%s4250_s14 + $0x38] sm:$0xff] %v2764_v38  ;;  %v2388_v50 = vpop.f32.mrb[7].mxu0 }
 0x2e9   : > { %2523 = vst [vmem:[%s4250_s14 + $0x30] sm:$0xff] %v2388_v50 }
 0x2ec   : > { %v2788_v3 = vpop.f32.mrb[6].mxu1 }
 0x2ed   : > { %2540 = vst [vmem:[%s4250_s14 + $0xb8] sm:$0xff] %v2788_v3  ;;  %v2468_v1 = vpop.f32.mrb[7].mxu1 }
 0x2ee   : > { %2539 = vst [vmem:[%s4250_s14 + $0xb0] sm:$0xff] %v2468_v1 }
 0x30f   : > { %v2767_v25 = vpop.f32.mrb[8].mxu0 }
 0x310   : > { %2526 = vst [vmem:[%s4250_s14 + $0x48] sm:$0xff] %v2767_v25  ;;  %v2398_v39 = vpop.f32.mrb[9].mxu0 }
 0x311   : > { %2525 = vst [vmem:[%s4250_s14 + $0x40] sm:$0xff] %v2398_v39 }
 0x314   : > { %v2791_v20 = vpop.f32.mrb[8].mxu1 }
 0x315   : > { %2542 = vst [vmem:[%s4250_s14 + $0xc8] sm:$0xff] %v2791_v20  ;;  %v2478_v17 = vpop.f32.mrb[9].mxu1 }
 0x316   : > { %2541 = vst [vmem:[%s4250_s14 + $0xc0] sm:$0xff] %v2478_v17 }
 0x337   : > { %v2770_v63 = vpop.f32.mrb[10].mxu0 }
 0x338   : > { %2528 = vst [vmem:[%s4250_s14 + $0x58] sm:$0xff] %v2770_v63  ;;  %v2408_v29 = vpop.f32.mrb[11].mxu0 }
 0x339   : > { %2527 = vst [vmem:[%s4250_s14 + $0x50] sm:$0xff] %v2408_v29 }
 0x33c   : > { %v2794_v37 = vpop.f32.mrb[10].mxu1 }
 0x33d   : > { %2544 = vst [vmem:[%s4250_s14 + $0xd8] sm:$0xff] %v2794_v37  ;;  %v2488_v4 = vpop.f32.mrb[11].mxu1 }
 0x33e   : > { %2543 = vst [vmem:[%s4250_s14 + $0xd0] sm:$0xff] %v2488_v4 }
 0x35f   : > { %v2773_v5 = vpop.f32.mrb[12].mxu0 }
 0x360   : > { %2530 = vst [vmem:[%s4250_s14 + $0x68] sm:$0xff] %v2773_v5  ;;  %v2418_v62 = vpop.f32.mrb[13].mxu0 }
 0x361   : > { %2529 = vst [vmem:[%s4250_s14 + $0x60] sm:$0xff] %v2418_v62 }
 0x364   : > { %v2797_v2 = vpop.f32.mrb[12].mxu1 }
 0x365   : > { %2546 = vst [vmem:[%s4250_s14 + $0xe8] sm:$0xff] %v2797_v2  ;;  %v2498_v46 = vpop.f32.mrb[13].mxu1 }
 0x366   : > { %2545 = vst [vmem:[%s4250_s14 + $0xe0] sm:$0xff] %v2498_v46 }
 0x37b   : > { %v2776_v14 = vpop.f32.mrb[14].mxu0 }
 0x37c   : > { %2532 = vst [vmem:[%s4250_s14 + $0x78] sm:$0xff] %v2776_v14  ;;  %v2428_v36 = vpop.f32.mrb[15].mxu0 }
 0x37d   : > { %2531 = vst [vmem:[%s4250_s14 + $0x70] sm:$0xff] %v2428_v36 }
 0x380   : > { %v2800_v47 = vpop.f32.mrb[14].mxu1 }
 0x381   : > { %2548 = vst [vmem:[%s4250_s14 + $0xf8] sm:$0xff] %v2800_v47  ;;  %v2508_v22 = vpop.f32.mrb[15].mxu1 }
 0x382   : > { %2547 = vst [vmem:[%s4250_s14 + $0xf0] sm:$0xff] %v2508_v22 }
 0x383   : > { %2941 = shalt.err (!%p2938_p3)
}
 0x384   : > { %s2942_s7 = scalar_lea.hbm %s4321_s28, 4096  ;;  %s2946_s10 = scalar_lea.hbm %s4375_s4, 8192 }
 0x385   : > { %p2943_p4 = scmp.ne.s32.totalorder %s4321_s28, %s2942_s7  ;;  %p2947_p9 = scmp.lt.u32.totalorder %s4321_s28, %s4375_s4 }
 0x386   : > { %p2948_p10 = scmp.lt.u32.totalorder %s2946_s10, %s2942_s7  ;;  %p2950_p12 = scmp.lt.u32.totalorder %s2942_s7, %s4321_s28 }
 0x387   : > { %p2944_p7 = pnand %p2943_p4, %p3066_p5 }
 0x388   : > { %p2949_p11 = por %p2948_p10, %p2947_p9 }
 0x389   : > { %p2945_p8 = pneg %p2944_p7 }
 0x38a   : > { %p2951_p13 = por %p2950_p12, %p2949_p11 }
 0x38c   : > { %p2952_p0 = pnand %p2951_p13, %p2945_p8 }
 0x38e   : > { %2955 = shalt.err (!%p2952_p0)
}
 0x38f   : > { %s3002_s14 = smov 128  }
 0x390   : > { %2815 = dma.vmem_to_hbm [thread:$0]  (%p3066_p5), %s4323_s22, 4096, %s4321_s28, %s4329_s29, %s3002_s14, %s3002_s14, %s2994_s11  }
 0x391 PF: > { %p2821_p1 = scmp.ge.s32.totalorder %s2990_s18, 2  ;;  %s2578_s20 = sand.u32 1, %s2978_s15  }
 0x392   : > { %s2579_s23 = scalar_lea.sflag [#allocation5], %s2578_s20 }
 0x393   : > { %p2818_p2 = pnand %p2821_p1, %p3070_p6 }
 0x395   : > { %2973 = dma.done.wait (!%p2818_p2), %s2579_s23, 4096  }
 0x396   : > { %2975 = vsyncadd (!%p2818_p2), %s2579_s23, 4294963200  ;;  %p14_p3 = scmp.ge.s32.totalorder %s3053_s21, 4   ;;  %s4378_s15 = smov %s2982_s16 }
 0x397   : > { %s4379_s16 = smov %s2986_s17  ;;  %s4380_s17 = smov %s3064_s24 }
 0x398   : > { %s4381_s18 = smov %s3053_s21  ;;  %16 = sbr.rel (!%p14_p3) target bundleno = 3 (0x3), region = 74 }
 0x39f   :  { %2584 = vsyncpa [#allocation5], 1 }
 0x3a0   :  { %2586 = vsyncpa [#allocation5 + $0x1], 1 }

</bundles_post_ra>
